<compile_context>
chip_gen: v6e
topology: v6e:2x2x1
jax: 0.10.0
libtpu: 0.0.40
codegen_flags: <defaults>
</compile_context>

<pallas_src>
import jax
import jax.numpy as jnp
from jax import lax
from jax.experimental import pallas as pl
from jax.experimental.pallas import tpu as pltpu


# -----------------------------------------------------------------------------
# Padding helpers (lane-dense layout).
# -----------------------------------------------------------------------------
def _round_up(x, m):
    return ((x + m - 1) // m) * m


def _pad2(a, cols):                       # (r, c) -> (r, cols)
    return jnp.pad(a, ((0, 0), (0, cols - a.shape[1])))


def _pad_mat(a, rows, cols):              # (r, c) -> (rows, cols)
    return jnp.pad(a, ((0, rows - a.shape[0]), (0, cols - a.shape[1])))


def _pad_w3(w, cin_p, cout_p):            # (K, Cin, Cout) -> (K, cin_p, cout_p)
    return jnp.pad(w, ((0, 0), (0, cin_p - w.shape[1]), (0, cout_p - w.shape[2])))


# -----------------------------------------------------------------------------
# Fused whole-net kernel (all blocks in one pallas_call, VMEM-resident chain).
# -----------------------------------------------------------------------------
def _make_fused_tcn_kernel(kcfgs, *, nb, L, cp_in, cp, mxu_dtype, fuse_taps):
    M = nb * L

    def kernel(x_ref, w_ref, b_ref, o_ref):
        # ---- hoisted once per grid step, reused by every conv in the chain --
        widths = sorted({cp} | {cfg["cin_p"] for cfg in kcfgs})
        t_idx = {}
        for w in widths:
            base = lax.broadcasted_iota(jnp.int32, (L, w), 0)   # within-batch t
            t_idx[w] = base if nb == 1 else jnp.concatenate([base] * nb, axis=0)
        masks = {}                                              # (width, shift) -> bool
        for cfg in kcfgs:
            ks, dil = cfg["kernel_size"], cfg["dilation"]
            for w in (cfg["cin_p"], cp):
                for k in range(ks):
                    s = (ks - 1 - k) * dil
                    if 0 < s < L and (w, s) not in masks:
                        masks[(w, s)] = t_idx[w] >= s

        def causal_conv(h, *, w_off, b_idx, ks, dil, cin_p):
            # h: (M, cin_p) f32.  Taps via one XLU roll each + causal mask; the
            # wrap-around rows crossing a batch boundary are exactly the rows
            # the causal mask zeroes, so the batch-flattened roll is exact.
            taps = []
            for k in range(ks):
                shift = (ks - 1 - k) * dil
                if shift >= L:
                    taps.append(None)                           # fully out of range
                elif shift == 0:
                    taps.append(h.astype(mxu_dtype))
                else:
                    rolled = pltpu.roll(h, shift, axis=0)       # XLU sublane rotate
                    taps.append(jnp.where(masks[(cin_p, shift)], rolled,
                                          0.0).astype(mxu_dtype))
            if fuse_taps:
                full = [t if t is not None
                        else jnp.zeros((M, cin_p), mxu_dtype) for t in taps]
                slab = full[0] if ks == 1 else jnp.concatenate(full, axis=-1)
                y = jnp.dot(slab, w_ref[pl.ds(w_off, ks * cin_p), :],
                            preferred_element_type=jnp.float32)
            else:
                # low-VMEM path (v7x): K accumulated matmuls, no K*cp-wide slab
                y = jnp.zeros((M, cp), jnp.float32)
                for k, tap in enumerate(taps):
                    if tap is None:
                        continue
                    y = y + jnp.dot(tap,
                                    w_ref[pl.ds(w_off + k * cin_p, cin_p), :],
                                    preferred_element_type=jnp.float32)
            return y + b_ref[pl.ds(b_idx, 1), :]                # single bias pass

        h = x_ref[...].reshape(M, cp_in).astype(jnp.float32)
        for cfg in kcfgs:
            ks, dil, cin_p = cfg["kernel_size"], cfg["dilation"], cfg["cin_p"]
            h1 = jnp.maximum(
                causal_conv(h, w_off=cfg["w1_off"], b_idx=cfg["b1_idx"],
                            ks=ks, dil=dil, cin_p=cin_p), 0.0)
            # TODO(synk): training-mode dropout not implemented (eval identity).
            h2 = jnp.maximum(
                causal_conv(h1, w_off=cfg["w2_off"], b_idx=cfg["b2_idx"],
                            ks=ks, dil=dil, cin_p=cp), 0.0)
            if cfg["has_downsample"]:
                res = (jnp.dot(h.astype(mxu_dtype),
                               w_ref[pl.ds(cfg["wd_off"], cin_p), :],
                               preferred_element_type=jnp.float32)
                       + b_ref[pl.ds(cfg["bd_idx"], 1), :])
            else:
                res = h                                         # identity residual
            h = jnp.maximum(h2 + res, 0.0)

        o_ref[...] = h.reshape(nb, L, cp).astype(o_ref.dtype)

    return kernel


# -----------------------------------------------------------------------------
# Batch-chunk auto sizing: aim for MXU M-dim >= 256, else keep >= 2 grid steps.
# -----------------------------------------------------------------------------
def _auto_nb(N, L):
    divisors = [d for d in range(1, N + 1) if N % d == 0]
    for d in divisors:                       # smallest chunk reaching the M target
        if 256 <= d * L <= 2048:
            return d
    for d in reversed(divisors):             # else biggest chunk with >= 2 grid steps
        if N // d >= 2 and d * L <= 2048:
            return d
    return 1


# -----------------------------------------------------------------------------
# Wrapper: MyTemporalConvNet forward (NCL in / NCL out, like PyTorch Conv1d).
# -----------------------------------------------------------------------------
def my_temporal_conv_net(x_ncl, block_params, block_cfgs, *, nb=None,
                         mxu_dtype=jnp.bfloat16, fuse_taps=True):
    N, c_in, L = x_ncl.shape
    if nb is None:
        nb = _auto_nb(N, L)
    assert N % nb == 0, "batch must be divisible by per-step batch chunk"

    # Lane-dense padded widths: cp covers every block output; the network input
    # is only padded to cp_in (widened to cp after the first conv in-kernel).
    cp = 128
    for (w1, _, w2, _, _, _) in block_params:
        cp = max(cp, _round_up(w1.shape[2], 128), _round_up(w2.shape[2], 128))
    first_has_ds = block_params[0][4] is not None
    cp_in = max(128, _round_up(c_in, 128)) if first_has_ds else cp

    c_final = block_params[-1][2].shape[2]                    # w2: (K, Ch, Cout)

    # ---- pack all weights into ONE (rows, cp) slab and biases into ONE stack.
    w_rows, b_rows, kcfgs = [], [], []
    row_off, bias_idx = 0, 0
    for bi, (params, cfg) in enumerate(zip(block_params, block_cfgs)):
        w1, b1, w2, b2, wd, bd = params
        ks, dil = cfg["kernel_size"], cfg["dilation"]
        cin_p = cp_in if bi == 0 else cp
        has_ds = wd is not None
        entry = dict(kernel_size=ks, dilation=dil, has_downsample=has_ds,
                     cin_p=cin_p)

        entry["w1_off"] = row_off
        w_rows.append(_pad_w3(w1, cin_p, cp).reshape(ks * cin_p, cp))
        row_off += ks * cin_p
        entry["w2_off"] = row_off
        w_rows.append(_pad_w3(w2, cp, cp).reshape(ks * cp, cp))
        row_off += ks * cp
        entry["b1_idx"] = bias_idx; b_rows.append(_pad2(b1, cp)); bias_idx += 1
        entry["b2_idx"] = bias_idx; b_rows.append(_pad2(b2, cp)); bias_idx += 1
        if has_ds:
            entry["wd_off"] = row_off
            w_rows.append(_pad_mat(wd, cin_p, cp)); row_off += cin_p
            entry["bd_idx"] = bias_idx; b_rows.append(_pad2(bd, cp)); bias_idx += 1
        kcfgs.append(entry)

    w_slab = jnp.concatenate(w_rows, axis=0).astype(mxu_dtype)    # (W_rows, cp)
    b_stack = jnp.concatenate(b_rows, axis=0).astype(jnp.float32)  # (n_bias, cp)

    # NCL -> NLC (time on sublanes, channels on lanes), pad lanes to cp_in only.
    x_nlc = jnp.transpose(x_ncl, (0, 2, 1))
    x_p = jnp.pad(x_nlc, ((0, 0), (0, 0), (0, cp_in - c_in)))

    # Explicit VMEM budget sized from the real working set (default scoped limit
    # would cap tile growth long before physical VMEM does).
    w_itemsize = jnp.dtype(mxu_dtype).itemsize
    max_ks = max(cfg["kernel_size"] for cfg in block_cfgs)
    act_bytes = nb * L * cp * 4 * (max_ks + 8)
    need = (2 * (w_slab.size * w_itemsize + b_stack.size * 4
                 + nb * L * cp_in * 4 + nb * L * cp * 4)
            + act_bytes + (1 << 20))
    vmem_limit = int(min(64 * 1024 * 1024, max(need, 32 * 1024 * 1024)))

    kernel = _make_fused_tcn_kernel(kcfgs, nb=nb, L=L, cp_in=cp_in, cp=cp,
                                    mxu_dtype=mxu_dtype, fuse_taps=fuse_taps)
    out_p = pl.pallas_call(
        kernel,
        out_shape=jax.ShapeDtypeStruct((N, L, cp), jnp.float32),
        grid_spec=pltpu.PrefetchScalarGridSpec(
            num_scalar_prefetch=0,
            grid=(N // nb,),
            in_specs=[
                pl.BlockSpec((nb, L, cp_in), lambda b: (b, 0, 0)),
                pl.BlockSpec(w_slab.shape, lambda b: (0, 0)),    # grid-invariant
                pl.BlockSpec(b_stack.shape, lambda b: (0, 0)),   # grid-invariant
            ],
            out_specs=pl.BlockSpec((nb, L, cp), lambda b: (b, 0, 0)),
        ),
        compiler_params=pltpu.CompilerParams(
            dimension_semantics=("parallel",),
            vmem_limit_bytes=vmem_limit),
    )(x_p, w_slab, b_stack)

    out = out_p[:, :, :c_final]                                  # drop lane padding
    return jnp.transpose(out, (0, 2, 1))                         # -> (N, Cout, L)


# -----------------------------------------------------------------------------
# Deterministic parameter construction.
# -----------------------------------------------------------------------------
def init_block_params(key, c_in, c_out, kernel_size):
    k1, k2, k3, k4, k5, k6 = jax.random.split(key, 6)
    # conv weights stored as (K, Cin, Cout) (transposed from PyTorch (Cout,Cin,K))
    w1 = 0.1 * jax.random.normal(k1, (kernel_size, c_in, c_out), jnp.float32)
    b1 = 0.05 * jax.random.normal(k2, (c_out,), jnp.float32)
    w2 = 0.1 * jax.random.normal(k3, (kernel_size, c_out, c_out), jnp.float32)
    b2 = 0.05 * jax.random.normal(k4, (c_out,), jnp.float32)
    if c_in != c_out:
        wd = 0.1 * jax.random.normal(k5, (c_in, c_out), jnp.float32)
        bd = 0.05 * jax.random.normal(k6, (c_out,), jnp.float32)
    else:
        wd = None                                                # identity residual
        bd = None
    return (w1, b1.reshape(1, c_out), w2, b2.reshape(1, c_out),
            wd, None if bd is None else bd.reshape(1, c_out))


# -----------------------------------------------------------------------------
# Pure-JAX reference (lax.conv_general_dilated) for correctness check.
# -----------------------------------------------------------------------------
def ref_block(x_ncl, params, *, kernel_size, dilation):
    w1, b1, w2, b2, wd, bd = params

    def conv(x, w_kio, b_row):
        w = jnp.transpose(w_kio, (2, 1, 0))                      # (Cout, Cin, K)
        pad = (kernel_size - 1) * dilation
        y = lax.conv_general_dilated(
            x, w, window_strides=(1,), padding=[(pad, pad)],
            rhs_dilation=(dilation,),
            dimension_numbers=("NCH", "OIH", "NCH"))
        y = y[:, :, :x.shape[2]]                                 # chomp
        return y + b_row[0][None, :, None]

    h1 = jax.nn.relu(conv(x_ncl, w1, b1))
    h2 = jax.nn.relu(conv(h1, w2, b2))
    if wd is None:
        res = x_ncl
    else:
        res = jnp.einsum("ncl,co->nol", x_ncl, wd) + bd[0][None, :, None]
    return jax.nn.relu(h2 + res)


def ref_net(x_ncl, block_params, block_cfgs):
    out = x_ncl
    for params, cfg in zip(block_params, block_cfgs):
        out = ref_block(out, params, kernel_size=cfg["kernel_size"],
                        dilation=cfg["dilation"])
    return out


# -----------------------------------------------------------------------------
if __name__ == "__main__":
    key = jax.random.PRNGKey(0)

    N, C_IN, L = 2, 4, 16
    KERNEL_SIZE = 3
    CHANNELS = [8, 8, 16]                                        # channels per block

    block_cfgs, block_params = [], []
    c_prev = C_IN
    for i, c_out in enumerate(CHANNELS):
        key, sub = jax.random.split(key)
        block_params.append(init_block_params(sub, c_prev, c_out, KERNEL_SIZE))
        block_cfgs.append({"kernel_size": KERNEL_SIZE, "dilation": 2 ** i})
        c_prev = c_out

    key, xk = jax.random.split(key)
    x = jax.random.normal(xk, (N, C_IN, L), jnp.float32)         # NCL (PyTorch layout)

    expected = ref_net(x, block_params, block_cfgs)

    # 1) Default perf path: auto batch chunk, bf16 MXU operands, fused-tap slab.
    out = jax.block_until_ready(my_temporal_conv_net(x, block_params, block_cfgs))
    assert out.shape == (N, CHANNELS[-1], L), out.shape
    assert jnp.allclose(out, expected, rtol=1e-1, atol=1e-1), (
        float(jnp.max(jnp.abs(out - expected))))

    # 2) f32 MXU, multi-batch chunk: exercises the batch-flattened roll and the
    #    causal mask across the batch boundary; bit-tight check.
    out32 = jax.block_until_ready(
        my_temporal_conv_net(x, block_params, block_cfgs, nb=2,
                             mxu_dtype=jnp.float32))
    assert jnp.allclose(out32, expected, rtol=1e-4, atol=1e-4), (
        float(jnp.max(jnp.abs(out32 - expected))))

    # 3) f32 MXU, per-tap accumulation path (the low-VMEM v7x variant).
    out32b = jax.block_until_ready(
        my_temporal_conv_net(x, block_params, block_cfgs, nb=2,
                             mxu_dtype=jnp.float32, fuse_taps=False))
    assert jnp.allclose(out32b, expected, rtol=1e-4, atol=1e-4), (
        float(jnp.max(jnp.abs(out32b - expected))))

    print("KERNEL_OK")
</pallas_src>

<mosaic_0001>
module attributes {stable_mosaic.version = 11 : i64} {
  func.func @kernel(%arg0: i32, %arg1: memref<1x16x128xf32, #tpu.memory_space<vmem>>, %arg2: memref<2560x128xbf16, #tpu.memory_space<vmem>>, %arg3: memref<8x128xf32, #tpu.memory_space<vmem>>, %arg4: memref<1x16x128xf32, #tpu.memory_space<vmem>>) attributes {dimension_semantics = [#tpu.dimension_semantics<parallel>], iteration_bounds = array<i64: 2>, scalar_prefetch = 0 : i64, scratch_operands = 0 : i64, tpu.core_type = #tpu.core_type<tc>, window_params = [{transform_indices = @transform_0, window_bounds = array<i64: 1, 16, 128>}, {pipeline_mode = #tpu.pipeline_mode<synchronous>, transform_indices = @transform_1, window_bounds = array<i64: 2560, 128>}, {pipeline_mode = #tpu.pipeline_mode<synchronous>, transform_indices = @transform_2, window_bounds = array<i64: 8, 128>}, {transform_indices = @transform_3, window_bounds = array<i64: 1, 16, 128>}]} {
    %0 = tpu.iota {dimensions = array<i32: 0>} : vector<16x128xi32>
    %c2_i32 = arith.constant 2 : i32
    %1 = vector.broadcast %c2_i32 : i32 to vector<16x128xi32>
    %2 = arith.cmpi sge, %0, %1 : vector<16x128xi32>
    %c1_i32 = arith.constant 1 : i32
    %3 = vector.broadcast %c1_i32 : i32 to vector<16x128xi32>
    %4 = arith.cmpi sge, %0, %3 : vector<16x128xi32>
    %c4_i32 = arith.constant 4 : i32
    %5 = vector.broadcast %c4_i32 : i32 to vector<16x128xi32>
    %6 = arith.cmpi sge, %0, %5 : vector<16x128xi32>
    %c8_i32 = arith.constant 8 : i32
    %7 = vector.broadcast %c8_i32 : i32 to vector<16x128xi32>
    %8 = arith.cmpi sge, %0, %7 : vector<16x128xi32>
    %c0 = arith.constant 0 : index
    %c0_0 = arith.constant 0 : index
    %c0_1 = arith.constant 0 : index
    %9 = vector.load %arg1[%c0, %c0_0, %c0_1] : memref<1x16x128xf32, #tpu.memory_space<vmem>>, vector<1x16x128xf32>
    %10 = vector.shape_cast %9 : vector<1x16x128xf32> to vector<16x128xf32>
    %c2_i32_2 = arith.constant 2 : i32
    %11 = tpu.dynamic_rotate %10 by %c2_i32_2 dim 0 : vector<16x128xf32>, i32 -> vector<16x128xf32>
    %cst = arith.constant 0.000000e+00 : f32
    %12 = vector.broadcast %cst : f32 to vector<16x128xf32>
    %13 = arith.select %2, %11, %12 : vector<16x128xi1>, vector<16x128xf32>
    %14 = arith.truncf %13 : vector<16x128xf32> to vector<16x128xbf16>
    %c1_i32_3 = arith.constant 1 : i32
    %15 = tpu.dynamic_rotate %10 by %c1_i32_3 dim 0 : vector<16x128xf32>, i32 -> vector<16x128xf32>
    %cst_4 = arith.constant 0.000000e+00 : f32
    %16 = vector.broadcast %cst_4 : f32 to vector<16x128xf32>
    %17 = arith.select %4, %15, %16 : vector<16x128xi1>, vector<16x128xf32>
    %18 = arith.truncf %17 : vector<16x128xf32> to vector<16x128xbf16>
    %19 = arith.truncf %10 : vector<16x128xf32> to vector<16x128xbf16>
    %20 = tpu.concatenate %14, %18, %19 in 1 : vector<16x128xbf16>, vector<16x128xbf16>, vector<16x128xbf16> -> vector<16x384xbf16>
    %c0_5 = arith.constant 0 : index
    %c0_6 = arith.constant 0 : index
    %21 = vector.load %arg2[%c0_5, %c0_6] : memref<2560x128xbf16, #tpu.memory_space<vmem>>, vector<384x128xbf16>
    %cst_7 = arith.constant dense<0.000000e+00> : vector<16x128xf32>
    %22 = tpu.matmul %20, %21, %cst_7 {dimension_numbers = #tpu.dot_dimension_numbers<[1], [0], [0], [1], [0, 0, 1, 1], [], []>} : vector<16x384xbf16>, vector<384x128xbf16>, vector<16x128xf32> -> vector<16x128xf32>
    %c0_8 = arith.constant 0 : index
    %c0_9 = arith.constant 0 : index
    %23 = vector.load %arg3[%c0_8, %c0_9] : memref<8x128xf32, #tpu.memory_space<vmem>>, vector<1x128xf32>
    %24 = vector.broadcast %23 : vector<1x128xf32> to vector<16x128xf32>
    %25 = arith.addf %22, %24 : vector<16x128xf32>
    %cst_10 = arith.constant 0.000000e+00 : f32
    %26 = vector.broadcast %cst_10 : f32 to vector<16x128xf32>
    %27 = arith.maximumf %25, %26 : vector<16x128xf32>
    %c2_i32_11 = arith.constant 2 : i32
    %28 = tpu.dynamic_rotate %27 by %c2_i32_11 dim 0 : vector<16x128xf32>, i32 -> vector<16x128xf32>
    %cst_12 = arith.constant 0.000000e+00 : f32
    %29 = vector.broadcast %cst_12 : f32 to vector<16x128xf32>
    %30 = arith.select %2, %28, %29 : vector<16x128xi1>, vector<16x128xf32>
    %31 = arith.truncf %30 : vector<16x128xf32> to vector<16x128xbf16>
    %c1_i32_13 = arith.constant 1 : i32
    %32 = tpu.dynamic_rotate %27 by %c1_i32_13 dim 0 : vector<16x128xf32>, i32 -> vector<16x128xf32>
    %cst_14 = arith.constant 0.000000e+00 : f32
    %33 = vector.broadcast %cst_14 : f32 to vector<16x128xf32>
    %34 = arith.select %4, %32, %33 : vector<16x128xi1>, vector<16x128xf32>
    %35 = arith.truncf %34 : vector<16x128xf32> to vector<16x128xbf16>
    %36 = arith.truncf %27 : vector<16x128xf32> to vector<16x128xbf16>
    %37 = tpu.concatenate %31, %35, %36 in 1 : vector<16x128xbf16>, vector<16x128xbf16>, vector<16x128xbf16> -> vector<16x384xbf16>
    %c384 = arith.constant 384 : index
    %c0_15 = arith.constant 0 : index
    %38 = vector.load %arg2[%c384, %c0_15] : memref<2560x128xbf16, #tpu.memory_space<vmem>>, vector<384x128xbf16>
    %cst_16 = arith.constant dense<0.000000e+00> : vector<16x128xf32>
    %39 = tpu.matmul %37, %38, %cst_16 {dimension_numbers = #tpu.dot_dimension_numbers<[1], [0], [0], [1], [0, 0, 1, 1], [], []>} : vector<16x384xbf16>, vector<384x128xbf16>, vector<16x128xf32> -> vector<16x128xf32>
    %c1 = arith.constant 1 : index
    %c0_17 = arith.constant 0 : index
    %40 = vector.load %arg3[%c1, %c0_17] : memref<8x128xf32, #tpu.memory_space<vmem>>, vector<1x128xf32>
    %41 = vector.broadcast %40 : vector<1x128xf32> to vector<16x128xf32>
    %42 = arith.addf %39, %41 : vector<16x128xf32>
    %cst_18 = arith.constant 0.000000e+00 : f32
    %43 = vector.broadcast %cst_18 : f32 to vector<16x128xf32>
    %44 = arith.maximumf %42, %43 : vector<16x128xf32>
    %45 = arith.truncf %10 : vector<16x128xf32> to vector<16x128xbf16>
    %c768 = arith.constant 768 : index
    %c0_19 = arith.constant 0 : index
    %46 = vector.load %arg2[%c768, %c0_19] : memref<2560x128xbf16, #tpu.memory_space<vmem>>, vector<128x128xbf16>
    %cst_20 = arith.constant dense<0.000000e+00> : vector<16x128xf32>
    %47 = tpu.matmul %45, %46, %cst_20 {dimension_numbers = #tpu.dot_dimension_numbers<[1], [0], [0], [1], [0, 0, 1, 1], [], []>} : vector<16x128xbf16>, vector<128x128xbf16>, vector<16x128xf32> -> vector<16x128xf32>
    %c2 = arith.constant 2 : index
    %c0_21 = arith.constant 0 : index
    %48 = vector.load %arg3[%c2, %c0_21] : memref<8x128xf32, #tpu.memory_space<vmem>>, vector<1x128xf32>
    %49 = vector.broadcast %48 : vector<1x128xf32> to vector<16x128xf32>
    %50 = arith.addf %47, %49 : vector<16x128xf32>
    %51 = arith.addf %44, %50 : vector<16x128xf32>
    %cst_22 = arith.constant 0.000000e+00 : f32
    %52 = vector.broadcast %cst_22 : f32 to vector<16x128xf32>
    %53 = arith.maximumf %51, %52 : vector<16x128xf32>
    %c4_i32_23 = arith.constant 4 : i32
    %54 = tpu.dynamic_rotate %53 by %c4_i32_23 dim 0 : vector<16x128xf32>, i32 -> vector<16x128xf32>
    %cst_24 = arith.constant 0.000000e+00 : f32
    %55 = vector.broadcast %cst_24 : f32 to vector<16x128xf32>
    %56 = arith.select %6, %54, %55 : vector<16x128xi1>, vector<16x128xf32>
    %57 = arith.truncf %56 : vector<16x128xf32> to vector<16x128xbf16>
    %c2_i32_25 = arith.constant 2 : i32
    %58 = tpu.dynamic_rotate %53 by %c2_i32_25 dim 0 : vector<16x128xf32>, i32 -> vector<16x128xf32>
    %cst_26 = arith.constant 0.000000e+00 : f32
    %59 = vector.broadcast %cst_26 : f32 to vector<16x128xf32>
    %60 = arith.select %2, %58, %59 : vector<16x128xi1>, vector<16x128xf32>
    %61 = arith.truncf %60 : vector<16x128xf32> to vector<16x128xbf16>
    %62 = arith.truncf %53 : vector<16x128xf32> to vector<16x128xbf16>
    %63 = tpu.concatenate %57, %61, %62 in 1 : vector<16x128xbf16>, vector<16x128xbf16>, vector<16x128xbf16> -> vector<16x384xbf16>
    %c896 = arith.constant 896 : index
    %c0_27 = arith.constant 0 : index
    %64 = vector.load %arg2[%c896, %c0_27] : memref<2560x128xbf16, #tpu.memory_space<vmem>>, vector<384x128xbf16>
    %cst_28 = arith.constant dense<0.000000e+00> : vector<16x128xf32>
    %65 = tpu.matmul %63, %64, %cst_28 {dimension_numbers = #tpu.dot_dimension_numbers<[1], [0], [0], [1], [0, 0, 1, 1], [], []>} : vector<16x384xbf16>, vector<384x128xbf16>, vector<16x128xf32> -> vector<16x128xf32>
    %c3 = arith.constant 3 : index
    %c0_29 = arith.constant 0 : index
    %66 = vector.load %arg3[%c3, %c0_29] : memref<8x128xf32, #tpu.memory_space<vmem>>, vector<1x128xf32>
    %67 = vector.broadcast %66 : vector<1x128xf32> to vector<16x128xf32>
    %68 = arith.addf %65, %67 : vector<16x128xf32>
    %cst_30 = arith.constant 0.000000e+00 : f32
    %69 = vector.broadcast %cst_30 : f32 to vector<16x128xf32>
    %70 = arith.maximumf %68, %69 : vector<16x128xf32>
    %c4_i32_31 = arith.constant 4 : i32
    %71 = tpu.dynamic_rotate %70 by %c4_i32_31 dim 0 : vector<16x128xf32>, i32 -> vector<16x128xf32>
    %cst_32 = arith.constant 0.000000e+00 : f32
    %72 = vector.broadcast %cst_32 : f32 to vector<16x128xf32>
    %73 = arith.select %6, %71, %72 : vector<16x128xi1>, vector<16x128xf32>
    %74 = arith.truncf %73 : vector<16x128xf32> to vector<16x128xbf16>
    %c2_i32_33 = arith.constant 2 : i32
    %75 = tpu.dynamic_rotate %70 by %c2_i32_33 dim 0 : vector<16x128xf32>, i32 -> vector<16x128xf32>
    %cst_34 = arith.constant 0.000000e+00 : f32
    %76 = vector.broadcast %cst_34 : f32 to vector<16x128xf32>
    %77 = arith.select %2, %75, %76 : vector<16x128xi1>, vector<16x128xf32>
    %78 = arith.truncf %77 : vector<16x128xf32> to vector<16x128xbf16>
    %79 = arith.truncf %70 : vector<16x128xf32> to vector<16x128xbf16>
    %80 = tpu.concatenate %74, %78, %79 in 1 : vector<16x128xbf16>, vector<16x128xbf16>, vector<16x128xbf16> -> vector<16x384xbf16>
    %c1280 = arith.constant 1280 : index
    %c0_35 = arith.constant 0 : index
    %81 = vector.load %arg2[%c1280, %c0_35] : memref<2560x128xbf16, #tpu.memory_space<vmem>>, vector<384x128xbf16>
    %cst_36 = arith.constant dense<0.000000e+00> : vector<16x128xf32>
    %82 = tpu.matmul %80, %81, %cst_36 {dimension_numbers = #tpu.dot_dimension_numbers<[1], [0], [0], [1], [0, 0, 1, 1], [], []>} : vector<16x384xbf16>, vector<384x128xbf16>, vector<16x128xf32> -> vector<16x128xf32>
    %c4 = arith.constant 4 : index
    %c0_37 = arith.constant 0 : index
    %83 = vector.load %arg3[%c4, %c0_37] : memref<8x128xf32, #tpu.memory_space<vmem>>, vector<1x128xf32>
    %84 = vector.broadcast %83 : vector<1x128xf32> to vector<16x128xf32>
    %85 = arith.addf %82, %84 : vector<16x128xf32>
    %cst_38 = arith.constant 0.000000e+00 : f32
    %86 = vector.broadcast %cst_38 : f32 to vector<16x128xf32>
    %87 = arith.maximumf %85, %86 : vector<16x128xf32>
    %88 = arith.addf %87, %53 : vector<16x128xf32>
    %cst_39 = arith.constant 0.000000e+00 : f32
    %89 = vector.broadcast %cst_39 : f32 to vector<16x128xf32>
    %90 = arith.maximumf %88, %89 : vector<16x128xf32>
    %c8_i32_40 = arith.constant 8 : i32
    %91 = tpu.dynamic_rotate %90 by %c8_i32_40 dim 0 : vector<16x128xf32>, i32 -> vector<16x128xf32>
    %cst_41 = arith.constant 0.000000e+00 : f32
    %92 = vector.broadcast %cst_41 : f32 to vector<16x128xf32>
    %93 = arith.select %8, %91, %92 : vector<16x128xi1>, vector<16x128xf32>
    %94 = arith.truncf %93 : vector<16x128xf32> to vector<16x128xbf16>
    %c4_i32_42 = arith.constant 4 : i32
    %95 = tpu.dynamic_rotate %90 by %c4_i32_42 dim 0 : vector<16x128xf32>, i32 -> vector<16x128xf32>
    %cst_43 = arith.constant 0.000000e+00 : f32
    %96 = vector.broadcast %cst_43 : f32 to vector<16x128xf32>
    %97 = arith.select %6, %95, %96 : vector<16x128xi1>, vector<16x128xf32>
    %98 = arith.truncf %97 : vector<16x128xf32> to vector<16x128xbf16>
    %99 = arith.truncf %90 : vector<16x128xf32> to vector<16x128xbf16>
    %100 = tpu.concatenate %94, %98, %99 in 1 : vector<16x128xbf16>, vector<16x128xbf16>, vector<16x128xbf16> -> vector<16x384xbf16>
    %c1664 = arith.constant 1664 : index
    %c0_44 = arith.constant 0 : index
    %101 = vector.load %arg2[%c1664, %c0_44] : memref<2560x128xbf16, #tpu.memory_space<vmem>>, vector<384x128xbf16>
    %cst_45 = arith.constant dense<0.000000e+00> : vector<16x128xf32>
    %102 = tpu.matmul %100, %101, %cst_45 {dimension_numbers = #tpu.dot_dimension_numbers<[1], [0], [0], [1], [0, 0, 1, 1], [], []>} : vector<16x384xbf16>, vector<384x128xbf16>, vector<16x128xf32> -> vector<16x128xf32>
    %c5 = arith.constant 5 : index
    %c0_46 = arith.constant 0 : index
    %103 = vector.load %arg3[%c5, %c0_46] : memref<8x128xf32, #tpu.memory_space<vmem>>, vector<1x128xf32>
    %104 = vector.broadcast %103 : vector<1x128xf32> to vector<16x128xf32>
    %105 = arith.addf %102, %104 : vector<16x128xf32>
    %cst_47 = arith.constant 0.000000e+00 : f32
    %106 = vector.broadcast %cst_47 : f32 to vector<16x128xf32>
    %107 = arith.maximumf %105, %106 : vector<16x128xf32>
    %c8_i32_48 = arith.constant 8 : i32
    %108 = tpu.dynamic_rotate %107 by %c8_i32_48 dim 0 : vector<16x128xf32>, i32 -> vector<16x128xf32>
    %cst_49 = arith.constant 0.000000e+00 : f32
    %109 = vector.broadcast %cst_49 : f32 to vector<16x128xf32>
    %110 = arith.select %8, %108, %109 : vector<16x128xi1>, vector<16x128xf32>
    %111 = arith.truncf %110 : vector<16x128xf32> to vector<16x128xbf16>
    %c4_i32_50 = arith.constant 4 : i32
    %112 = tpu.dynamic_rotate %107 by %c4_i32_50 dim 0 : vector<16x128xf32>, i32 -> vector<16x128xf32>
    %cst_51 = arith.constant 0.000000e+00 : f32
    %113 = vector.broadcast %cst_51 : f32 to vector<16x128xf32>
    %114 = arith.select %6, %112, %113 : vector<16x128xi1>, vector<16x128xf32>
    %115 = arith.truncf %114 : vector<16x128xf32> to vector<16x128xbf16>
    %116 = arith.truncf %107 : vector<16x128xf32> to vector<16x128xbf16>
    %117 = tpu.concatenate %111, %115, %116 in 1 : vector<16x128xbf16>, vector<16x128xbf16>, vector<16x128xbf16> -> vector<16x384xbf16>
    %c2048 = arith.constant 2048 : index
    %c0_52 = arith.constant 0 : index
    %118 = vector.load %arg2[%c2048, %c0_52] : memref<2560x128xbf16, #tpu.memory_space<vmem>>, vector<384x128xbf16>
    %cst_53 = arith.constant dense<0.000000e+00> : vector<16x128xf32>
    %119 = tpu.matmul %117, %118, %cst_53 {dimension_numbers = #tpu.dot_dimension_numbers<[1], [0], [0], [1], [0, 0, 1, 1], [], []>} : vector<16x384xbf16>, vector<384x128xbf16>, vector<16x128xf32> -> vector<16x128xf32>
    %c6 = arith.constant 6 : index
    %c0_54 = arith.constant 0 : index
    %120 = vector.load %arg3[%c6, %c0_54] : memref<8x128xf32, #tpu.memory_space<vmem>>, vector<1x128xf32>
    %121 = vector.broadcast %120 : vector<1x128xf32> to vector<16x128xf32>
    %122 = arith.addf %119, %121 : vector<16x128xf32>
    %cst_55 = arith.constant 0.000000e+00 : f32
    %123 = vector.broadcast %cst_55 : f32 to vector<16x128xf32>
    %124 = arith.maximumf %122, %123 : vector<16x128xf32>
    %125 = arith.truncf %90 : vector<16x128xf32> to vector<16x128xbf16>
    %c2432 = arith.constant 2432 : index
    %c0_56 = arith.constant 0 : index
    %126 = vector.load %arg2[%c2432, %c0_56] : memref<2560x128xbf16, #tpu.memory_space<vmem>>, vector<128x128xbf16>
    %cst_57 = arith.constant dense<0.000000e+00> : vector<16x128xf32>
    %127 = tpu.matmul %125, %126, %cst_57 {dimension_numbers = #tpu.dot_dimension_numbers<[1], [0], [0], [1], [0, 0, 1, 1], [], []>} : vector<16x128xbf16>, vector<128x128xbf16>, vector<16x128xf32> -> vector<16x128xf32>
    %c7 = arith.constant 7 : index
    %c0_58 = arith.constant 0 : index
    %128 = vector.load %arg3[%c7, %c0_58] : memref<8x128xf32, #tpu.memory_space<vmem>>, vector<1x128xf32>
    %129 = vector.broadcast %128 : vector<1x128xf32> to vector<16x128xf32>
    %130 = arith.addf %127, %129 : vector<16x128xf32>
    %131 = arith.addf %124, %130 : vector<16x128xf32>
    %cst_59 = arith.constant 0.000000e+00 : f32
    %132 = vector.broadcast %cst_59 : f32 to vector<16x128xf32>
    %133 = arith.maximumf %131, %132 : vector<16x128xf32>
    %134 = vector.shape_cast %133 : vector<16x128xf32> to vector<1x16x128xf32>
    %c0_60 = arith.constant 0 : index
    %c0_61 = arith.constant 0 : index
    %c0_62 = arith.constant 0 : index
    %135 = vector.load %arg4[%c0_60, %c0_61, %c0_62] : memref<1x16x128xf32, #tpu.memory_space<vmem>>, vector<1x16x128xf32>
    tpu.vector_store %arg4[%c0_60, %c0_61, %c0_62], %134 {strides = array<i32>} : memref<1x16x128xf32, #tpu.memory_space<vmem>>, vector<1x16x128xf32>,
    return
  }
  func.func @transform_0(%arg0: i32) -> (i32, i32, i32) {
    %c0_i32 = arith.constant 0 : i32
    %c0_i32_0 = arith.constant 0 : i32
    %c0_i32_1 = arith.constant 0 : i32
    return %arg0, %c0_i32, %c0_i32_0 : i32, i32, i32
  }
  func.func @transform_1(%arg0: i32) -> (i32, i32) {
    %c0_i32 = arith.constant 0 : i32
    %c0_i32_0 = arith.constant 0 : i32
    %c0_i32_1 = arith.constant 0 : i32
    return %c0_i32, %c0_i32_0 : i32, i32
  }
  func.func @transform_2(%arg0: i32) -> (i32, i32) {
    %c0_i32 = arith.constant 0 : i32
    %c0_i32_0 = arith.constant 0 : i32
    %c0_i32_1 = arith.constant 0 : i32
    return %c0_i32, %c0_i32_0 : i32, i32
  }
  func.func @transform_3(%arg0: i32) -> (i32, i32, i32) {
    %c0_i32 = arith.constant 0 : i32
    %c0_i32_0 = arith.constant 0 : i32
    %c0_i32_1 = arith.constant 0 : i32
    return %arg0, %c0_i32, %c0_i32_0 : i32, i32, i32
  }
}

</mosaic_0001>

<bundles_post_ra>
// kernel: tpu_custom_call.1
= control target key start
LH: loop header
LB: loop body
LE: loop exit
PB: predicated region body
PF: predicated region fallthrough
CT: control target
= control target key end

     0   :  { %8 = vsyncpa [#allocation3], 0  ;;  %s3725_s0 = inlined_call_operand.hbm [shape: f32[2,16,128], index: 0, kind: input, shape index: {}]   ;;  %s3726_s1 = inlined_call_operand.hbm [shape: bf16[2560,128], index: 1, kind: input, shape index: {}]   ;;  %s3727_s2 = inlined_call_operand.hbm [shape: f32[8,128], index: 2, kind: input, shape index: {}]   ;;  %s3728_s3 = inlined_call_operand.hbm [shape: f32[2,16,128], index: 3, kind: output, shape index: {}]  }
   0x1   :  { %10 = vsyncpa [#allocation3 + $0x1], 0 }
   0x2   :  { %11 = vsyncpa [#allocation6], 0 }
   0x3   :  { %12 = vsyncpa [#allocation4], 0 }
   0x4   :  { %14 = vsyncpa [#allocation4 + $0x1], 0  ;;  %s3342_s12 = smov 0   ;;  %s3344_s13 = smov 0  }
   0x5   :  { %s3346_s14 = smov 0   ;;  %s3348_s15 = smov 0  }
   0x6 LB: > { %s3363_s16 = sadd.s32 4294967295, %s3307_s15   ;;  %s2341_s17 = sadd.s32 4294967294, %s3307_s15   ;;  %s3307_s15 = sphi %s3348_s15, %s3756_s15   ;;  %s3303_s14 = sphi %s3346_s14, %s3755_s14   ;;  %s3299_s13 = sphi %s3344_s13, %s3754_s13   ;;  %s3295_s12 = sphi %s3342_s12, %s3753_s12  }
   0x7   : > { %p40_p0 = scmp.ne.s32.totalorder %s3299_s13, %s3295_s12  ;;  %p3729_p1 = scmp.eq.s32.totalorder %s3363_s16, 0 }
   0x8   : > { %p112_p3 = scmp.eq.s32.totalorder %s2341_s17, 1  ;;  %p2342_p5 = scmp.ge.s32.totalorder %s3307_s15, 1 }
   0x9   : > { %p3372_p4 = por %p3729_p1, %p40_p0  ;;  %p119_p7 = scmp.lt.s32.totalorder %s3307_s15, 3 }
   0xa   : > { %p3377_p6 = por %p112_p3, %p40_p0  ;;  %s3309_s21 = smov [#allocation5]  }
   0xb   : > { %s3733_s18 = scalar_select %p3372_p4, 1, 0 }
   0xc   : > { %s3734_s19 = scalar_select %p3377_p6, 1, 0 }
   0xd   : > { %p3382_p8 = pnand %p2342_p5, %p119_p7  ;;  %s131_s22 = sshll.u32 %s3309_s21, 4  ;;  %s132_s22 = int_to_ptr.vmem [resolvable:$true] %s131_s22 }
   0xe   : > { %s3310_s24 = smov [#allocation7]   ;;  %s3170_s26 = scalar_lea.vmem %s132_s22, 20480 }
   0xf   : > { %s3735_s20 = scalar_select %p3382_p8, 1, 0 }
  0x10   : > { %p2935_p9 = pneg %p3382_p8  ;;  %s145_s25 = sshll.u32 %s3310_s24, 4  ;;  %s146_s25 = int_to_ptr.vmem [resolvable:$true] %s145_s25 }
  0x11   : > { %p3171_p13 = scmp.ne.s32.totalorder %s132_s22, %s3170_s26  ;;  %p3178_p5 = scmp.lt.s32.totalorder %s132_s22, %s132_s22 }
  0x12   : > { %p3391_p11 = pnand %p2935_p9, %p3729_p1  ;;  %p3179_p7 = scmp.lt.s32.totalorder %s3170_s26, %s3170_s26 }
  0x14   : > { %p3161_p12 = pneg %p3391_p11  ;;  %p3180_p10 = por %p3179_p7, %p3178_p5 }
  0x16   : > { %p3173_p0 = pnand %p3171_p13, %p3161_p12 }
  0x18   : > { %p3174_p3 = pneg %p3173_p0 }
  0x1a   : > { %p3181_p9 = pnand %p3180_p10, %p3174_p3 }
  0x1c   : > { %3184 = shalt.err (!%p3181_p9)
}
  0x1d   : > { %s3311_s27 = smov 64   ;;  %s3312_s28 = smov 4  }
  0x1e   : > { %2938 = dma.hbm_to_vmem [thread:$0]  (!%p3391_p11), %s3726_s1, 20480, %s132_s22, [#allocation6], %s3311_s27, %s3311_s27, %s3312_s28  }
  0x1f   : > { %s3196_s4 = scalar_lea.vmem %s146_s25, 128  ;;  %p3204_p2 = scmp.lt.s32.totalorder %s146_s25, %s146_s25 }
  0x20   : > { %p3197_p1 = scmp.ne.s32.totalorder %s146_s25, %s3196_s4  ;;  %p3205_p6 = scmp.lt.s32.totalorder %s3196_s4, %s3196_s4 }
  0x22   : > { %p3199_p13 = pnand %p3197_p1, %p3161_p12  ;;  %p3206_p5 = por %p3205_p6, %p3204_p2 }
  0x24   : > { %p3200_p0 = pneg %p3199_p13 }
  0x26   : > { %p3207_p10 = pnand %p3206_p5, %p3200_p0 }
  0x28   : > { %3210 = shalt.err (!%p3207_p10)
}
  0x29   : > { %2941 = dma.hbm_to_vmem [thread:$0]  (!%p3391_p11), %s3727_s2, 128, %s146_s25, [#allocation6]  }
  0x2a   : > { %s3414_s7 = sadd.s32 1, %s3307_s15   ;;  %s27_s8 = sadd.s32 1, %s3303_s14 }
  0x2b   : > { %s24_s9 = ssub.s32 %s3307_s15, %s3414_s7  ;;  %p34_p1 = scmp.ne.s32.totalorder %s3303_s14, %s3299_s13 }
  0x2c   : > { %p25_p2 = scmp.eq.s32.totalorder %s24_s9, 0  ;;  %p35_p6 = scmp.eq.s32.totalorder %s3307_s15, 0 }
  0x2d   : > { %p3737_p12 = scmp.eq.s32.totalorder %s3363_s16, 1  ;;  %p2952_p7 = scmp.lt.s32.totalorder %s3307_s15, 2 }
  0x2e   : > { %s3430_s11 = scalar_select %p25_p2, %s3303_s14, %s27_s8  }
  0x2f   : > { %p3424_p3 = por %p3737_p12, %p34_p1  ;;  %p36_p9 = por %p35_p6, %p34_p1 }
  0x30   : > { %s156_s17 = sand.u32 1, %s3303_s14   ;;  %s2557_s22 = sshll.u32 %s3307_s15, 8 }
  0x31   : > { %s3738_s10 = scalar_select %p3424_p3, 1, 0 }
  0x32   : > { %s2346_s21 = sshll.u32 %s156_s17, 4  ;;  %s3437_s25 = scalar_lea.hbm %s3725_s0, %s2557_s22 }
  0x33   : > { %s160_s26 = scalar_lea.vmem [#allocation2], %s2346_s21  ;;  %p3441_p11 = pnand %p2952_p7, %p36_p9 }
  0x34   : > { %s167_s27 = sshll.u32 %s160_s26, 4  ;;  %s3445_s29 = scalar_lea.sflag [#allocation3], %s156_s17  ;;  %s3439_s27 = int_to_ptr.vmem [resolvable:$true] %s167_s27 }
  0x35   : > { %s3211_s30 = scalar_lea.hbm %s3437_s25, 256  ;;  %p3213_p0 = pneg %p3441_p11 }
  0x36   : > { %p3212_p13 = scmp.ne.s32.totalorder %s3437_s25, %s3211_s30  ;;  %s3216_s6 = scalar_lea.hbm %s3725_s0, 512 }
  0x37   : > { %p3217_p1 = scmp.lt.s32.totalorder %s3437_s25, %s3725_s0  ;;  %p3218_p2 = scmp.lt.s32.totalorder %s3216_s6, %s3211_s30 }
  0x38   : > { %p3214_p5 = pnand %p3213_p0, %p3212_p13 }
  0x39   : > { %p3219_p6 = por %p3218_p2, %p3217_p1 }
  0x3a   : > { %p3215_p10 = pneg %p3214_p5 }
  0x3c   : > { %p3220_p12 = pnand %p3219_p6, %p3215_p10 }
  0x3e   : > { %3223 = shalt.err (!%p3220_p12)
}
  0x3f   : > { %s3224_s17 = scalar_lea.vmem %s3439_s27, 256  ;;  %s3313_s21 = smov [#allocation2]  }
  0x40   : > { %p3225_p7 = scmp.ne.s32.totalorder %s3439_s27, %s3224_s17  ;;  %s3229_s22 = sshll.u32 %s3313_s21, 4  ;;  %s3230_s22 = int_to_ptr.vmem [resolvable:$false] %s3229_s22 }
  0x41   : > { %s3231_s23 = scalar_lea.vmem %s3230_s22, 512  ;;  %p3232_p5 = scmp.lt.s32.totalorder %s3439_s27, %s3230_s22 }
  0x42   : > { %p3227_p9 = pnand %p3225_p7, %p3213_p0  ;;  %p3233_p3 = scmp.lt.s32.totalorder %s3231_s23, %s3224_s17 }
  0x44   : > { %p3228_p13 = pneg %p3227_p9  ;;  %p3234_p4 = por %p3233_p3, %p3232_p5 }
  0x46   : > { %p3235_p8 = pnand %p3234_p4, %p3228_p13 }
  0x48   : > { %3238 = shalt.err (!%p3235_p8)
}
  0x49   : > { %s3314_s24 = smov 128   ;;  %s3315_s26 = smov 8  }
  0x4a   : > { %2945 = dma.hbm_to_vmem [thread:$0]  (!%p3441_p11), %s3437_s25, 256, %s3439_s27, %s3445_s29, %s3314_s24, %s3314_s24, %s3315_s26  }
  0x4b   : > { %p3740_p0 = scmp.ne.s32.totalorder %s3735_s20, 0 }
  0x4c   : > { %s3469_s30 = sand.u32 (!%p3740_p0), 1, %s3299_s13   ;;  %p3741_p4 = scmp.ne.s32.totalorder (!%p3740_p0), %s3733_s18, 0 }
  0x4d   : > { %179 = sbr.rel (%p3740_p0) target bundleno = 1466 (0x5ba), region = 32  ;;  %s2350_s4 = sshll.u32 (!%p3740_p0), %s3469_s30, 4 }
  0x4e   : > { %s182_s5 = scalar_lea.sflag (!%p3740_p0), [#allocation3], %s3469_s30  ;;  %s3475_s6 = scalar_lea.vmem (!%p3740_p0), [#allocation2], %s2350_s4 }
  0x52   : > { %3282 = dma.done.wait (%p3741_p4), %s182_s5, 256  }
  0x53   : > { %3284 = vsyncadd (%p3741_p4), %s182_s5, 4294967040  ;;  %p3742_p8 = scmp.eq.s32.totalorder %s3363_s16, 0 }
  0x55   : > { %3286 = dma.done.wait (%p3742_p8), [#allocation6], 20608   ;;  %p3743_p3 = pmov %p3742_p8 }
  0x56   : > { %v3316_v0 = vmov 0.0   ;;  %vm3317_vm0 = vmmov 0   ;;  %v2999_v1 = vld [vmem:[#allocation5 + $0x78] sm:$0xff]   ;;  %v3002_v4 = vld [vmem:[#allocation5 + $0x70] sm:$0xff]   ;;  %v3005_v7 = vld [vmem:[#allocation5 + $0x68] sm:$0xff]   ;;  %v217_v17 = vlaneseq  ;;  %vm3318_vm4 = vmmov 1  }
  0x57   : > { %3288 = vsyncadd (%p3743_p3), [#allocation6], 4294946688  ;;  %2763 = vmatprep.subr.bf16.mxu1 %v3316_v0  ;;  %2779 = vmatprep.mubr.msk.bf16.mxu1 %vm3317_vm0, %v3316_v0  ;;  %v3000_v2 = vld [vmem:[#allocation5 + $0x38] sm:$0xff]   ;;  %v3003_v5 = vld [vmem:[#allocation5 + $0x30] sm:$0xff]   ;;  %s215_s18 = scalar_lea.vmem [#allocation8], %s2350_s4  ;;  %s2558_s25 = sshll.u32 %s3363_s16, 8 }
  0x58   : > { %2559 = vmatprep.subr.bf16.mxu0 %v2999_v1  ;;  %v3001_v3 = vld [vmem:[#allocation5 + $0xb8] sm:$0xff]   ;;  %v3004_v6 = vld [vmem:[#allocation5 + $0xb0] sm:$0xff]   ;;  %v3006_v8 = vld [vmem:[#allocation5 + $0x28] sm:$0xff]   ;;  %v3492_v21 = vshrl.u32 %v217_v17, 7  ;;  %s2249_s20 = sshll.u32 %s215_s18, 4  ;;  %s3682_s29 = scalar_lea.hbm %s3728_s3, %s2558_s25  ;;  %s3677_s20 = int_to_ptr.vmem [resolvable:$true] %s2249_s20 }
  0x59   : > { %2560 = vmatpush3.bf16.msra.mxu0 %v3000_v2  ;;  %2764 = vmatpush3.bf16.msra.mxu1 %v3001_v3  ;;  %v3007_v9 = vld [vmem:[#allocation5 + $0xa8] sm:$0xff]   ;;  %v3008_v10 = vld [vmem:[#allocation5 + $0x60] sm:$0xff]   ;;  %v3011_v13 = vld [vmem:[#allocation5 + $0x58] sm:$0xff]   ;;  %s2236_s8 = scalar_lea.sflag [#allocation4], %s3469_s30  ;;  %s3239_s9 = scalar_lea.vmem %s3677_s20, 256 }
  0x5a   : > { %2561 = vmatprep.subr.bf16.mxu0 %v3002_v4  ;;  %2765 = vmatprep.subr.bf16.mxu1 %v3316_v0  ;;  %v3009_v11 = vld [vmem:[#allocation5 + $0x20] sm:$0xff]   ;;  %v3012_v14 = vld [vmem:[#allocation5 + $0x18] sm:$0xff]   ;;  %v3014_v16 = vld [vmem:[#allocation5 + $0x50] sm:$0xff]   ;;  %vm222_vm1 = vcmp.ge.s32.totalorder %v3492_v21, 1  ;;  %vm240_vm2 = vcmp.lt.s32.totalorder %v3492_v21, 1  ;;  %vm232_vm3 = vcmp.lt.s32.totalorder %v3492_v21, 2  ;;  %p3240_p11 = scmp.ne.s32.totalorder %s3677_s20, %s3239_s9 }
  0x5b   : > { %v3010_v12 = vld [vmem:[#allocation5 + $0xa0] sm:$0xff]   ;;  %v3013_v15 = vld [vmem:[#allocation5 + $0x98] sm:$0xff]   ;;  %v3015_v18 = vld [vmem:[#allocation5 + $0x10] sm:$0xff]   ;;  %vm220_vm6 = vcmp.ge.s32.totalorder %v3492_v21, 2  ;;  %vm224_vm8 = vcmp.ge.s32.totalorder %v3492_v21, 4  ;;  %vm940_vm9 = vcmp.lt.s32.totalorder %v3492_v21, 4 }
  0x5c   : > { %v3016_v19 = vld [vmem:[#allocation5 + $0x90] sm:$0xff]   ;;  %v3017_v20 = vld [vmem:[#allocation5 + $0x48] sm:$0xff]   ;;  %v3020_v24 = vld [vmem:[#allocation5 + $0x40] sm:$0xff]   ;;  %p3750_p10 = scmp.ne.s32.totalorder %s3738_s10, 0  ;;  %s3319_s16 = smov [#allocation8]  }
  0x5d   : > { %2562 = vmatpush3.bf16.msra.mxu0 %v3003_v5  ;;  %2766 = vmatpush3.bf16.msra.mxu1 %v3004_v6  ;;  %v3018_v22 = vld [vmem:[#allocation5 + $0x8] sm:$0xff]   ;;  %v228_v25 = vld [vmem:[%s3475_s6] sm:$0xff]  ;;  %vm3504_vm5 = vmpackc.low %vm3318_vm4, %vm222_vm1  ;;  %s3243_s17 = sshll.u32 %s3319_s16, 4  ;;  %s3244_s17 = int_to_ptr.vmem [resolvable:$false] %s3243_s17 }
  0x5e   : > { %2563 = vmatprep.subr.bf16.mxu0 %v3005_v7  ;;  %2767 = vmatprep.subr.bf16.mxu1 %v3316_v0  ;;  %v3019_v23 = vld [vmem:[#allocation5 + $0x88] sm:$0xff]   ;;  %v230_v27 = vrot.slane %v228_v25, 6  ;;  %v238_v29 = vrot.slane %v228_v25, 7  ;;  %v3021_v32 = vld [vmem:[#allocation5] sm:$0xff]   ;;  %v3024_v39 = vld [vmem:[#allocation5 + $0x138] sm:$0xff]   ;;  %p3241_p1 = pnand %p3240_p11, %p3750_p10  ;;  %s3245_s21 = scalar_lea.vmem %s3244_s17, 512 }
  0x5f   : > { %v229_v26 = vld [vmem:[%s3475_s6 + $0x8] sm:$0xff]  ;;  %v3022_v33 = vld [vmem:[#allocation5 + $0x80] sm:$0xff]   ;;  %vm3519_vm7 = vmpackc.low %vm3318_vm4, %vm220_vm6  ;;  %p3246_p6 = scmp.lt.s32.totalorder %s3677_s20, %s3244_s17  ;;  %p3247_p12 = scmp.lt.s32.totalorder %s3245_s21, %s3239_s9 }
  0x60   : > { %v231_v28 = vrot.slane %v229_v26, 6  ;;  %v239_v30 = vrot.slane %v229_v26, 7  ;;  %v3023_v42 = vld [vmem:[#allocation5 + $0x178] sm:$0xff]   ;;  %v3525_v43 = vpack.c.bf16 %v229_v26, %v228_v25  ;;  %v3027_v45 = vld [vmem:[#allocation5 + $0x130] sm:$0xff]   ;;  %v3030_v48 = vld [vmem:[#allocation5 + $0x128] sm:$0xff]   ;;  %p3242_p2 = pneg %p3241_p1 }
  0x61   : > { %2564 = vmatpush3.bf16.msra.mxu0 %v3006_v8  ;;  %2768 = vmatpush3.bf16.msra.mxu1 %v3007_v9  ;;  %v3025_v44 = vld [vmem:[#allocation5 + $0xf8] sm:$0xff]   ;;  %v3026_v46 = vld [vmem:[#allocation5 + $0x170] sm:$0xff]   ;;  %v3031_v49 = vld [vmem:[#allocation5 + $0xe8] sm:$0xff]   ;;  %p3248_p7 = por %p3247_p12, %p3246_p6 }
  0x62   : > { %2565 = vmatprep.subr.bf16.mxu0 %v3008_v10  ;;  %2769 = vmatprep.subr.bf16.mxu1 %v3316_v0  ;;  %v241_v34 = vsel %vm240_vm2, %v238_v29, %v239_v30  ;;  %v242_v35 = vsel %vm240_vm2, %v239_v30, %v238_v29  ;;  %v233_v36 = vsel %vm232_vm3, %v230_v27, %v231_v28  ;;  %v3028_v47 = vld [vmem:[#allocation5 + $0xf0] sm:$0xff]   ;;  %v3029_v50 = vld [vmem:[#allocation5 + $0x168] sm:$0xff]   ;;  %v3032_v51 = vld [vmem:[#allocation5 + $0x160] sm:$0xff]  }
  0x63   : > { %v234_v37 = vsel %vm232_vm3, %v231_v28, %v230_v27  ;;  %v2380_v38 = vpack.c.bf16 %v241_v34, %v242_v35  ;;  %v3033_v52 = vld [vmem:[#allocation5 + $0x120] sm:$0xff]   ;;  %v3035_v54 = vld [vmem:[#allocation5 + $0x158] sm:$0xff]   ;;  %v3038_v57 = vld [vmem:[#allocation5 + $0x150] sm:$0xff]   ;;  %p3249_p9 = pnand %p3248_p7, %p3242_p2 }
  0x64   : > { %v2383_v41 = vpack.c.bf16 %v233_v36, %v234_v37  ;;  %v3034_v53 = vld [vmem:[#allocation5 + $0xe0] sm:$0xff]   ;;  %v3036_v55 = vld [vmem:[#allocation5 + $0x118] sm:$0xff]   ;;  %v3039_v58 = vld [vmem:[#allocation5 + $0x110] sm:$0xff]  }
  0x65   : > { %2566 = vmatpush3.bf16.msra.mxu0 %v3009_v11  ;;  %2770 = vmatpush3.bf16.msra.mxu1 %v3010_v12  ;;  %v3037_v56 = vld [vmem:[#allocation5 + $0xd8] sm:$0xff]   ;;  %v3040_v59 = vld [vmem:[#allocation5 + $0xd0] sm:$0xff]   ;;  %v3041_v60 = vld [vmem:[#allocation5 + $0x148] sm:$0xff]  }
  0x66   : > { %2567 = vmatprep.subr.bf16.mxu0 %v3011_v13  ;;  %2771 = vmatprep.subr.bf16.mxu1 %v3316_v0  ;;  %v3042_v61 = vld [vmem:[#allocation5 + $0x108] sm:$0xff]   ;;  %v3044_v63 = vld [vmem:[#allocation5 + $0x140] sm:$0xff]   ;;  %v3048_v34 = vld [vmem:[#allocation5 + $0x1b0] sm:$0xff]  }
  0x67   : > { %2381 = vmatprep.mubr.msk.bf16.mxu0 %vm3504_vm5, %v2380_v38  ;;  %v3043_v62 = vld [vmem:[#allocation5 + $0xc8] sm:$0xff]   ;;  %v3045_v1 = vld [vmem:[#allocation5 + $0x100] sm:$0xff]   ;;  %v3051_v31 = vld [vmem:[#allocation5 + $0x198] sm:$0xff]  }
  0x68   : > { %v3046_v2 = vld [vmem:[#allocation5 + $0xc0] sm:$0xff]   ;;  %v3049_v35 = vld [vmem:[#allocation5 + $0x1a8] sm:$0xff]   ;;  %v3052_v37 = vld [vmem:[#allocation5 + $0x190] sm:$0xff]  }
  0x69   : > { %2568 = vmatpush3.bf16.msra.mxu0 %v3012_v14  ;;  %2772 = vmatpush3.bf16.msra.mxu1 %v3013_v15  ;;  %v2354_v5 = vld [vmem:[#allocation7] ss:$0 sm:$0xff]  ;;  %v3053_v38 = vld [vmem:[#allocation5 + $0x188] sm:$0xff]   ;;  %vm3595_vm10 = vmpackc.low %vm3318_vm4, %vm224_vm8 }
  0x6a   : > { %2569 = vmatprep.subr.bf16.mxu0 %v3014_v16  ;;  %2773 = vmatprep.subr.bf16.mxu1 %v3316_v0  ;;  %v3050_v36 = vld [vmem:[#allocation5 + $0x1a0] sm:$0xff]  }
  0x6b   : > { %v3113_v40 = vld [vmem:[#allocation5 + $0x3a0] sm:$0xff]  }
  0x6c   : > { %v3154_v21 = vld [vmem:[#allocation5 + $0x4e0] sm:$0xff]  }
  0x6d   : > { %2570 = vmatpush3.bf16.msra.mxu0 %v3015_v18  ;;  %2774 = vmatpush3.bf16.msra.mxu1 %v3016_v19 }
  0x6e   : > { %2571 = vmatprep.subr.bf16.mxu0 %v3017_v20  ;;  %2775 = vmatprep.subr.bf16.mxu1 %v3316_v0 }
  0x71   : > { %2572 = vmatpush3.bf16.msra.mxu0 %v3018_v22  ;;  %2776 = vmatpush3.bf16.msra.mxu1 %v3019_v23 }
  0x72   : > { %2573 = vmatprep.subr.bf16.mxu0 %v3020_v24  ;;  %2777 = vmatprep.subr.bf16.mxu1 %v3316_v0 }
  0x75   : > { %2574 = vmatpush3.bf16.msra.mxu0 %v3021_v32  ;;  %2778 = vmatpush3.bf16.msra.mxu1 %v3022_v33  ;;  %v3047_v33 = vld [vmem:[#allocation5 + $0x1b8] sm:$0xff]  }
  0x76   : > { %2590 = vmatprep.subr.bf16.mxu0 %v3024_v39  ;;  %2783 = vmatprep.subr.bf16.mxu1 %v3316_v0  ;;  %v3054_v39 = vld [vmem:[#allocation5 + $0x180] sm:$0xff]  }
  0x78   : > { %2384 = vmatmul.mubr.msk.bf16.vlgmr.msra.gmra.mxu0 %vm3519_vm7, %v2383_v41  ;;  %2780 = vmatmul.mubr.bf16.vlgmr.msra.gmra.mxu1 %v3525_v43  ;;  %v3055_v41 = vld [vmem:[#allocation5 + $0x278] sm:$0xff]  }
  0x79   : > { %2591 = vmatpush3.bf16.msra.mxu0 %v3025_v44  ;;  %2784 = vmatpush3.bf16.msra.mxu1 %v3023_v42  ;;  %v3056_v42 = vld [vmem:[#allocation5 + $0x238] sm:$0xff]  }
  0x7a   : > { %2592 = vmatprep.subr.bf16.mxu0 %v3027_v45  ;;  %2785 = vmatprep.subr.bf16.mxu1 %v3316_v0  ;;  %v3057_v44 = vld [vmem:[#allocation5 + $0x1f8] sm:$0xff]   ;;  %v3059_v45 = vld [vmem:[#allocation5 + $0x230] sm:$0xff]  }
  0x7b   : > { %2799 = vmatprep.mubr.msk.bf16.mxu1 %vm3317_vm0, %v3316_v0 }
  0x7d   : > { %2593 = vmatpush3.bf16.msra.mxu0 %v3028_v47  ;;  %2786 = vmatpush3.bf16.msra.mxu1 %v3026_v46  ;;  %v3058_v46 = vld [vmem:[#allocation5 + $0x270] sm:$0xff]  }
  0x7e   : > { %2594 = vmatprep.subr.bf16.mxu0 %v3030_v48  ;;  %2787 = vmatprep.subr.bf16.mxu1 %v3316_v0  ;;  %v3060_v47 = vld [vmem:[#allocation5 + $0x1f0] sm:$0xff]   ;;  %v3062_v48 = vld [vmem:[#allocation5 + $0x228] sm:$0xff]  }
  0x81   : > { %2595 = vmatpush3.bf16.msra.mxu0 %v3031_v49  ;;  %2788 = vmatpush3.bf16.msra.mxu1 %v3029_v50  ;;  %v3061_v49 = vld [vmem:[#allocation5 + $0x268] sm:$0xff]   ;;  %v3065_v50 = vld [vmem:[#allocation5 + $0x220] sm:$0xff]  }
  0x82   : > { %2789 = vmatprep.subr.bf16.mxu1 %v3316_v0  ;;  %2596 = vmatprep.subr.bf16.mxu0 %v3033_v52  ;;  %v3066_v52 = vld [vmem:[#allocation5 + $0x1e0] sm:$0xff]  }
  0x85   : > { %2790 = vmatpush3.bf16.msra.mxu1 %v3032_v51  ;;  %2597 = vmatpush3.bf16.msra.mxu0 %v3034_v53  ;;  %v3064_v51 = vld [vmem:[#allocation5 + $0x260] sm:$0xff]   ;;  %v3067_v53 = vld [vmem:[#allocation5 + $0x258] sm:$0xff]  }
  0x86   : > { %2791 = vmatprep.subr.bf16.mxu1 %v3316_v0  ;;  %2598 = vmatprep.subr.bf16.mxu0 %v3036_v55  ;;  %v3069_v55 = vld [vmem:[#allocation5 + $0x1d8] sm:$0xff]  }
  0x89   : > { %2792 = vmatpush3.bf16.msra.mxu1 %v3035_v54  ;;  %2599 = vmatpush3.bf16.msra.mxu0 %v3037_v56  ;;  %v3068_v54 = vld [vmem:[#allocation5 + $0x218] sm:$0xff]   ;;  %v3070_v56 = vld [vmem:[#allocation5 + $0x250] sm:$0xff]  }
  0x8a   : > { %2793 = vmatprep.subr.bf16.mxu1 %v3316_v0  ;;  %2600 = vmatprep.subr.bf16.mxu0 %v3039_v58  ;;  %v3072_v58 = vld [vmem:[#allocation5 + $0x1d0] sm:$0xff]  }
  0x8d   : > { %2794 = vmatpush3.bf16.msra.mxu1 %v3038_v57  ;;  %2601 = vmatpush3.bf16.msra.mxu0 %v3040_v59  ;;  %v3071_v57 = vld [vmem:[#allocation5 + $0x210] sm:$0xff]   ;;  %v3073_v59 = vld [vmem:[#allocation5 + $0x248] sm:$0xff]  }
  0x8e   : > { %2795 = vmatprep.subr.bf16.mxu1 %v3316_v0  ;;  %2602 = vmatprep.subr.bf16.mxu0 %v3042_v61  ;;  %v3075_v61 = vld [vmem:[#allocation5 + $0x1c8] sm:$0xff]  }
  0x91   : > { %2796 = vmatpush3.bf16.msra.mxu1 %v3041_v60  ;;  %2603 = vmatpush3.bf16.msra.mxu0 %v3043_v62  ;;  %v3074_v60 = vld [vmem:[#allocation5 + $0x208] sm:$0xff]   ;;  %v3076_v62 = vld [vmem:[#allocation5 + $0x240] sm:$0xff]  }
  0x92   : > { %2797 = vmatprep.subr.bf16.mxu1 %v3316_v0  ;;  %2604 = vmatprep.subr.bf16.mxu0 %v3045_v1  ;;  %v3078_v1 = vld [vmem:[#allocation5 + $0x1c0] sm:$0xff]  }
  0x95   : > { %2798 = vmatpush3.bf16.msra.mxu1 %v3044_v63  ;;  %2605 = vmatpush3.bf16.msra.mxu0 %v3046_v2  ;;  %v3077_v63 = vld [vmem:[#allocation5 + $0x200] sm:$0xff]   ;;  %v3080_v2 = vld [vmem:[#allocation5 + $0x2f8] sm:$0xff]  }
  0x96   : > { %2803 = vmatprep.subr.bf16.mxu0 %v3316_v0  ;;  %2630 = vmatprep.subr.bf16.mxu1 %v3056_v42 }
 0x138   : > { %v2575_v3 = vpop.f32.mrf.mxu0  ;;  %v519_v4 = vpop.f32.mrf.mxu1 }
 0x13a   : > { %v2576_v6 = vpop.f32.mrf.mxu0  ;;  %v2781_v8 = vpop.f32.mrf.mxu1 }
 0x13b   : > { %v2577_v7 = vadd.f32 %v2576_v6, %v2575_v3 }
 0x13c   : > { %v2578_v9 = vpop.f32.mrf.mxu0  ;;  %v522_v11 = vpop.f32.mrf.mxu1 }
 0x13d   : > { %v479_v10 = vadd.f32 %v2577_v7, %v2354_v5 }
 0x13e   : > { %v2579_v12 = vpop.f32.mrf.mxu0  ;;  %v2782_v15 = vpop.f32.mrf.mxu1 }
 0x13f   : > { %v520_v13 = vadd.f32 %v519_v4, %v479_v10  ;;  %v2580_v14 = vadd.f32 %v2579_v12, %v2578_v9 }
 0x141   : > { %v482_v16 = vadd.f32 %v2580_v14, %v2354_v5  ;;  %v526_v17 = vmax.f32 %v520_v13, 0.0 }
 0x143   : > { %v523_v18 = vadd.f32 %v522_v11, %v482_v16  ;;  %v528_v20 = vrot.slane %v526_v17, 6  ;;  %v535_v22 = vrot.slane %v526_v17, 7  ;;  %v2385_v11 = vld [vmem:[#allocation7 + $0x1] ss:$0 sm:$0xff] }
 0x145   : > { %v527_v19 = vmax.f32 %v523_v18, 0.0 }
 0x147   : > { %v529_v23 = vrot.slane %v527_v19, 6  ;;  %v536_v24 = vrot.slane %v527_v19, 7  ;;  %v542_v25 = vpack.c.bf16 %v527_v19, %v526_v17  ;;  %v2416_v17 = vld [vmem:[#allocation7 + $0x2] ss:$0 sm:$0xff] }
 0x149   : > { %2800 = vmatmul.mubr.bf16.vlgmr.msra.gmra.mxu1 %v542_v25  ;;  %v537_v26 = vsel %vm240_vm2, %v535_v22, %v536_v24  ;;  %v538_v27 = vsel %vm240_vm2, %v536_v24, %v535_v22  ;;  %v530_v28 = vsel %vm232_vm3, %v528_v20, %v529_v23  ;;  %v531_v29 = vsel %vm232_vm3, %v529_v23, %v528_v20 }
 0x14a   : > { %v2411_v30 = vpack.c.bf16 %v537_v26, %v538_v27  ;;  %v2414_v32 = vpack.c.bf16 %v530_v28, %v531_v29  ;;  %2631 = vmatpush3.bf16.msra.mxu1 %v3057_v44  ;;  %v3156_v44 = vld [vmem:[#allocation5 + $0x4d0] sm:$0xff]  }
 0x14b   : > { %2632 = vmatprep.subr.bf16.mxu1 %v3059_v45 }
 0x14c   : > { %2412 = vmatprep.mubr.msk.bf16.mxu0 %vm3504_vm5, %v2411_v30 }
 0x14d   : > { %2415 = vmatmul.mubr.msk.bf16.vlgmr.msra.gmra.mxu0 %vm3519_vm7, %v2414_v32 }
 0x14e   : > { %2804 = vmatpush3.bf16.msra.mxu0 %v3047_v33  ;;  %2819 = vmatprep.mubr.msk.bf16.mxu0 %vm3317_vm0, %v3316_v0 }
 0x14f   : > { %2805 = vmatprep.subr.bf16.mxu0 %v3316_v0  ;;  %2633 = vmatpush3.bf16.msra.mxu1 %v3060_v47  ;;  %v3081_v47 = vld [vmem:[#allocation5 + $0x2b8] sm:$0xff]  }
 0x150   : > { %2634 = vmatprep.subr.bf16.mxu1 %v3062_v48  ;;  %v3082_v48 = vld [vmem:[#allocation5 + $0x330] sm:$0xff]  }
 0x152   : > { %2806 = vmatpush3.bf16.msra.mxu0 %v3048_v34  ;;  %v3079_v34 = vld [vmem:[#allocation5 + $0x338] sm:$0xff]  }
 0x153   : > { %2807 = vmatprep.subr.bf16.mxu0 %v3316_v0 }
 0x156   : > { %2808 = vmatpush3.bf16.msra.mxu0 %v3049_v35 }
 0x157   : > { %2809 = vmatprep.subr.bf16.mxu0 %v3316_v0 }
 0x15a   : > { %2810 = vmatpush3.bf16.msra.mxu0 %v3050_v36 }
 0x15b   : > { %2811 = vmatprep.subr.bf16.mxu0 %v3316_v0 }
 0x15e   : > { %2812 = vmatpush3.bf16.msra.mxu0 %v3051_v31 }
 0x15f   : > { %2813 = vmatprep.subr.bf16.mxu0 %v3316_v0 }
 0x162   : > { %2814 = vmatpush3.bf16.msra.mxu0 %v3052_v37 }
 0x163   : > { %2815 = vmatprep.subr.bf16.mxu0 %v3316_v0 }
 0x166   : > { %2816 = vmatpush3.bf16.msra.mxu0 %v3053_v38 }
 0x167   : > { %2817 = vmatprep.subr.bf16.mxu0 %v3316_v0 }
 0x16a   : > { %2818 = vmatpush3.bf16.msra.mxu0 %v3054_v39 }
 0x16b   : > { %2823 = vmatprep.subr.bf16.mxu0 %v3316_v0 }
 0x16d   : > { %2820 = vmatmul.mubr.bf16.vlgmr.msra.gmra.mxu0 %v3525_v43  ;;  %v3063_v43 = vld [vmem:[#allocation5 + $0x1e8] sm:$0xff]  }
 0x16e   : > { %2839 = vmatprep.mubr.msk.bf16.mxu0 %vm3317_vm0, %v3316_v0  ;;  %2824 = vmatpush3.bf16.msra.mxu0 %v3055_v41 }
 0x16f   : > { %2825 = vmatprep.subr.bf16.mxu0 %v3316_v0  ;;  %2635 = vmatpush3.bf16.msra.mxu1 %v3063_v43  ;;  %v3084_v43 = vld [vmem:[#allocation5 + $0x2b0] sm:$0xff]  }
 0x170   : > { %2636 = vmatprep.subr.bf16.mxu1 %v3065_v50  ;;  %v3085_v50 = vld [vmem:[#allocation5 + $0x328] sm:$0xff]  }
 0x172   : > { %2826 = vmatpush3.bf16.msra.mxu0 %v3058_v46 }
 0x173   : > { %2827 = vmatprep.subr.bf16.mxu0 %v3316_v0  ;;  %2637 = vmatpush3.bf16.msra.mxu1 %v3066_v52  ;;  %v3087_v52 = vld [vmem:[#allocation5 + $0x2a8] sm:$0xff]  }
 0x174   : > { %2638 = vmatprep.subr.bf16.mxu1 %v3068_v54  ;;  %v3089_v54 = vld [vmem:[#allocation5 + $0x2e0] sm:$0xff]  }
 0x176   : > { %2828 = vmatpush3.bf16.msra.mxu0 %v3061_v49  ;;  %v3083_v49 = vld [vmem:[#allocation5 + $0x2f0] sm:$0xff]  }
 0x177   : > { %2829 = vmatprep.subr.bf16.mxu0 %v3316_v0  ;;  %2639 = vmatpush3.bf16.msra.mxu1 %v3069_v55  ;;  %v3090_v55 = vld [vmem:[#allocation5 + $0x2a0] sm:$0xff]  }
 0x178   : > { %2640 = vmatprep.subr.bf16.mxu1 %v3071_v57  ;;  %v3092_v57 = vld [vmem:[#allocation5 + $0x2d8] sm:$0xff]  }
 0x17a   : > { %2830 = vmatpush3.bf16.msra.mxu0 %v3064_v51  ;;  %v3086_v51 = vld [vmem:[#allocation5 + $0x2e8] sm:$0xff]  }
 0x17b   : > { %2831 = vmatprep.subr.bf16.mxu0 %v3316_v0  ;;  %2641 = vmatpush3.bf16.msra.mxu1 %v3072_v58  ;;  %v3093_v58 = vld [vmem:[#allocation5 + $0x298] sm:$0xff]  }
 0x17c   : > { %2642 = vmatprep.subr.bf16.mxu1 %v3074_v60  ;;  %v3095_v60 = vld [vmem:[#allocation5 + $0x2d0] sm:$0xff]  }
 0x17e   : > { %2832 = vmatpush3.bf16.msra.mxu0 %v3067_v53  ;;  %v3088_v53 = vld [vmem:[#allocation5 + $0x320] sm:$0xff]  }
 0x17f   : > { %2833 = vmatprep.subr.bf16.mxu0 %v3316_v0  ;;  %2643 = vmatpush3.bf16.msra.mxu1 %v3075_v61  ;;  %v3096_v61 = vld [vmem:[#allocation5 + $0x290] sm:$0xff]  }
 0x180   : > { %2644 = vmatprep.subr.bf16.mxu1 %v3077_v63  ;;  %v3098_v63 = vld [vmem:[#allocation5 + $0x2c8] sm:$0xff]  }
 0x182   : > { %2834 = vmatpush3.bf16.msra.mxu0 %v3070_v56  ;;  %v3091_v56 = vld [vmem:[#allocation5 + $0x318] sm:$0xff]  }
 0x183   : > { %2835 = vmatprep.subr.bf16.mxu0 %v3316_v0  ;;  %2645 = vmatpush3.bf16.msra.mxu1 %v3078_v1  ;;  %v3099_v1 = vld [vmem:[#allocation5 + $0x288] sm:$0xff]  }
 0x184   : > { %2661 = vmatprep.subr.bf16.mxu1 %v3080_v2  ;;  %v3100_v2 = vld [vmem:[#allocation5 + $0x300] sm:$0xff]  }
 0x186   : > { %2836 = vmatpush3.bf16.msra.mxu0 %v3073_v59  ;;  %v3094_v59 = vld [vmem:[#allocation5 + $0x310] sm:$0xff]  }
 0x187   : > { %2837 = vmatprep.subr.bf16.mxu0 %v3316_v0 }
 0x18a   : > { %2838 = vmatpush3.bf16.msra.mxu0 %v3076_v62  ;;  %v3097_v62 = vld [vmem:[#allocation5 + $0x308] sm:$0xff]  }
 0x18b   : > { %2843 = vmatprep.subr.bf16.mxu0 %v3316_v0 }
 0x209   : > { %v815_v3 = vpop.f32.mrf.mxu1 }
 0x20b   : > { %v2801_v4 = vpop.f32.mrf.mxu1 }
 0x20c   : > { %v3102_v4 = vld [vmem:[#allocation5 + $0x280] sm:$0xff]  }
 0x20d   : > { %v818_v5 = vpop.f32.mrf.mxu1  ;;  %v2606_v7 = vpop.f32.mrf.mxu0 }
 0x20f   : > { %v2802_v6 = vpop.f32.mrf.mxu1  ;;  %v2607_v8 = vpop.f32.mrf.mxu0 }
 0x210   : > { %v2608_v10 = vadd.f32 %v2607_v8, %v2606_v7 }
 0x211   : > { %v2609_v9 = vpop.f32.mrf.mxu0 }
 0x212   : > { %v775_v13 = vadd.f32 %v2608_v10, %v2385_v11  ;;  %v2425_v10 = vld [vmem:[#allocation7 + $0x3] ss:$0 sm:$0xff] }
 0x213   : > { %v2610_v12 = vpop.f32.mrf.mxu0 }
 0x214   : > { %v2611_v14 = vadd.f32 %v2610_v12, %v2609_v9  ;;  %v816_v15 = vadd.f32 %v815_v3, %v775_v13  ;;  %v3101_v3 = vld [vmem:[#allocation5 + $0x2c0] sm:$0xff]  }
 0x216   : > { %v778_v16 = vadd.f32 %v2611_v14, %v2385_v11  ;;  %v822_v20 = vmax.f32 %v816_v15, 0.0 }
 0x218   : > { %v819_v19 = vadd.f32 %v818_v5, %v778_v16  ;;  %v3104_v5 = vld [vmem:[#allocation5 + $0x3b8] sm:$0xff]  }
 0x21a   : > { %v823_v26 = vmax.f32 %v819_v19, 0.0 }
 0x22d   : > { %v927_v18 = vpop.f32.mrf.mxu0 }
 0x22e   : > { %v928_v22 = vadd.f32 %v2416_v17, %v927_v18 }
 0x22f   : > { %v2821_v23 = vpop.f32.mrf.mxu0 }
 0x230   : > { %v934_v24 = vadd.f32 %v928_v22, %v822_v20 }
 0x231   : > { %v930_v25 = vpop.f32.mrf.mxu0 }
 0x232   : > { %v931_v27 = vadd.f32 %v2416_v17, %v930_v25  ;;  %v3574_v28 = vmax.f32 %v934_v24, 0.0  ;;  %v3103_v25 = vld [vmem:[#allocation5 + $0x3f8] sm:$0xff]  }
 0x233   : > { %v2822_v29 = vpop.f32.mrf.mxu0 }
 0x234   : > { %v935_v30 = vadd.f32 %v931_v27, %v823_v26  ;;  %v938_v33 = vrot.slane %v3574_v28, 4  ;;  %v946_v35 = vrot.slane %v3574_v28, 6 }
 0x236   : > { %v3576_v32 = vmax.f32 %v935_v30, 0.0 }
 0x238   : > { %v939_v36 = vrot.slane %v3576_v32, 4  ;;  %v947_v31 = vrot.slane %v3576_v32, 6  ;;  %v953_v37 = vpack.c.bf16 %v3576_v32, %v3574_v28 }
 0x23a   : > { %2840 = vmatmul.mubr.bf16.vlgmr.msra.gmra.mxu0 %v953_v37  ;;  %v948_v38 = vsel %vm232_vm3, %v946_v35, %v947_v31  ;;  %v949_v39 = vsel %vm232_vm3, %v947_v31, %v946_v35  ;;  %v941_v41 = vsel %vm940_vm9, %v938_v33, %v939_v36  ;;  %v942_v42 = vsel %vm940_vm9, %v939_v36, %v938_v33 }
 0x23b   : > { %v2451_v45 = vpack.c.bf16 %v948_v38, %v949_v39  ;;  %v2454_v46 = vpack.c.bf16 %v941_v41, %v942_v42  ;;  %2844 = vmatpush3.bf16.msra.mxu0 %v3079_v34  ;;  %2859 = vmatprep.mubr.msk.bf16.mxu0 %vm3317_vm0, %v3316_v0  ;;  %v3105_v38 = vld [vmem:[#allocation5 + $0x378] sm:$0xff]   ;;  %v3106_v39 = vld [vmem:[#allocation5 + $0x3f0] sm:$0xff]  }
 0x23c   : > { %2845 = vmatprep.subr.bf16.mxu0 %v3316_v0  ;;  %v3107_v41 = vld [vmem:[#allocation5 + $0x3b0] sm:$0xff]  }
 0x23d   : > { %2452 = vmatprep.mubr.msk.bf16.mxu1 %vm3519_vm7, %v2451_v45  ;;  %v3108_v42 = vld [vmem:[#allocation5 + $0x370] sm:$0xff]   ;;  %v3109_v45 = vld [vmem:[#allocation5 + $0x3e8] sm:$0xff]  }
 0x23e   : > { %2455 = vmatmul.mubr.msk.bf16.vlgmr.msra.gmra.mxu1 %vm3595_vm10, %v2454_v46  ;;  %v3110_v46 = vld [vmem:[#allocation5 + $0x3a8] sm:$0xff]  }
 0x23f   : > { %2662 = vmatpush3.bf16.msra.mxu1 %v3081_v47  ;;  %2846 = vmatpush3.bf16.msra.mxu0 %v3082_v48  ;;  %v3111_v47 = vld [vmem:[#allocation5 + $0x368] sm:$0xff]   ;;  %v3112_v48 = vld [vmem:[#allocation5 + $0x3e0] sm:$0xff]  }
 0x240   : > { %2663 = vmatprep.subr.bf16.mxu1 %v3083_v49  ;;  %2847 = vmatprep.subr.bf16.mxu0 %v3316_v0  ;;  %v3114_v49 = vld [vmem:[#allocation5 + $0x360] sm:$0xff]  }
 0x243   : > { %2664 = vmatpush3.bf16.msra.mxu1 %v3084_v43  ;;  %2848 = vmatpush3.bf16.msra.mxu0 %v3085_v50  ;;  %v3115_v43 = vld [vmem:[#allocation5 + $0x3d8] sm:$0xff]  }
 0x244   : > { %2849 = vmatprep.subr.bf16.mxu0 %v3316_v0  ;;  %2665 = vmatprep.subr.bf16.mxu1 %v3086_v51  ;;  %v3116_v50 = vld [vmem:[#allocation5 + $0x398] sm:$0xff]  }
 0x245   : > { %v3117_v51 = vld [vmem:[#allocation5 + $0x358] sm:$0xff]  }
 0x247   : > { %2666 = vmatpush3.bf16.msra.mxu1 %v3087_v52  ;;  %2850 = vmatpush3.bf16.msra.mxu0 %v3088_v53  ;;  %v3118_v52 = vld [vmem:[#allocation5 + $0x3d0] sm:$0xff]  }
 0x248   : > { %2851 = vmatprep.subr.bf16.mxu0 %v3316_v0  ;;  %2667 = vmatprep.subr.bf16.mxu1 %v3089_v54  ;;  %v3119_v53 = vld [vmem:[#allocation5 + $0x390] sm:$0xff]  }
 0x249   : > { %v3120_v54 = vld [vmem:[#allocation5 + $0x350] sm:$0xff]  }
 0x24b   : > { %2668 = vmatpush3.bf16.msra.mxu1 %v3090_v55  ;;  %2852 = vmatpush3.bf16.msra.mxu0 %v3091_v56  ;;  %v3121_v55 = vld [vmem:[#allocation5 + $0x3c8] sm:$0xff]  }
 0x24c   : > { %2853 = vmatprep.subr.bf16.mxu0 %v3316_v0  ;;  %2669 = vmatprep.subr.bf16.mxu1 %v3092_v57  ;;  %v3122_v56 = vld [vmem:[#allocation5 + $0x388] sm:$0xff]  }
 0x24d   : > { %v3123_v57 = vld [vmem:[#allocation5 + $0x348] sm:$0xff]  }
 0x24f   : > { %2670 = vmatpush3.bf16.msra.mxu1 %v3093_v58  ;;  %2854 = vmatpush3.bf16.msra.mxu0 %v3094_v59  ;;  %v3124_v58 = vld [vmem:[#allocation5 + $0x3c0] sm:$0xff]  }
 0x250   : > { %2855 = vmatprep.subr.bf16.mxu0 %v3316_v0  ;;  %2671 = vmatprep.subr.bf16.mxu1 %v3095_v60  ;;  %v3125_v59 = vld [vmem:[#allocation5 + $0x380] sm:$0xff]  }
 0x251   : > { %v3126_v60 = vld [vmem:[#allocation5 + $0x340] sm:$0xff]  }
 0x253   : > { %2672 = vmatpush3.bf16.msra.mxu1 %v3096_v61  ;;  %2856 = vmatpush3.bf16.msra.mxu0 %v3097_v62  ;;  %v3128_v61 = vld [vmem:[#allocation5 + $0x478] sm:$0xff]  }
 0x254   : > { %2857 = vmatprep.subr.bf16.mxu0 %v3316_v0  ;;  %2673 = vmatprep.subr.bf16.mxu1 %v3098_v63 }
 0x257   : > { %2674 = vmatpush3.bf16.msra.mxu1 %v3099_v1  ;;  %2858 = vmatpush3.bf16.msra.mxu0 %v3100_v2 }
 0x258   : > { %2863 = vmatprep.subr.bf16.mxu0 %v3316_v0  ;;  %2675 = vmatprep.subr.bf16.mxu1 %v3101_v3  ;;  %v2456_v3 = vld [vmem:[#allocation7 + $0x4] ss:$0 sm:$0xff] }
 0x25b   : > { %2676 = vmatpush3.bf16.msra.mxu1 %v3102_v4 }
 0x25c   : > { %2692 = vmatprep.subr.bf16.mxu1 %v3104_v5 }
 0x2fa   : > { %v1226_v6 = vpop.f32.mrf.mxu0 }
 0x2fc   : > { %v2841_v7 = vpop.f32.mrf.mxu0 }
 0x2fe   : > { %v2646_v8 = vpop.f32.mrf.mxu1  ;;  %v1229_v9 = vpop.f32.mrf.mxu0 }
 0x300   : > { %v2647_v11 = vpop.f32.mrf.mxu1  ;;  %v2842_v12 = vpop.f32.mrf.mxu0 }
 0x301   : > { %v2648_v13 = vadd.f32 %v2647_v11, %v2646_v8 }
 0x302   : > { %v2649_v14 = vpop.f32.mrf.mxu1 }
 0x303   : > { %v1186_v15 = vadd.f32 %v2648_v13, %v2425_v10 }
 0x304   : > { %v2650_v16 = vpop.f32.mrf.mxu1 }
 0x305   : > { %v1227_v17 = vadd.f32 %v1226_v6, %v1186_v15  ;;  %v2651_v18 = vadd.f32 %v2650_v16, %v2649_v14 }
 0x307   : > { %v1189_v19 = vadd.f32 %v2651_v18, %v2425_v10  ;;  %v1233_v20 = vmax.f32 %v1227_v17, 0.0 }
 0x309   : > { %v1230_v22 = vadd.f32 %v1229_v9, %v1189_v19  ;;  %v1235_v24 = vrot.slane %v1233_v20, 4  ;;  %v1242_v26 = vrot.slane %v1233_v20, 6 }
 0x30b   : > { %v1234_v23 = vmax.f32 %v1230_v22, 0.0 }
 0x30d   : > { %v1236_v27 = vrot.slane %v1234_v23, 4  ;;  %v1243_v29 = vrot.slane %v1234_v23, 6  ;;  %v1249_v30 = vpack.c.bf16 %v1234_v23, %v1233_v20  ;;  %v3127_v20 = vld [vmem:[#allocation5 + $0x4b8] sm:$0xff]  }
 0x30f   : > { %2860 = vmatmul.mubr.bf16.vlgmr.msra.gmra.mxu0 %v1249_v30  ;;  %v1244_v33 = vsel %vm232_vm3, %v1242_v26, %v1243_v29  ;;  %v1245_v34 = vsel %vm232_vm3, %v1243_v29, %v1242_v26  ;;  %v1237_v35 = vsel %vm940_vm9, %v1235_v24, %v1236_v27  ;;  %v1238_v36 = vsel %vm940_vm9, %v1236_v27, %v1235_v24  ;;  %v3129_v27 = vld [vmem:[#allocation5 + $0x438] sm:$0xff]   ;;  %v3130_v29 = vld [vmem:[#allocation5 + $0x4b0] sm:$0xff]  }
 0x310   : > { %v2482_v31 = vpack.c.bf16 %v1244_v33, %v1245_v34  ;;  %v2485_v37 = vpack.c.bf16 %v1237_v35, %v1238_v36  ;;  %2864 = vmatpush3.bf16.msra.mxu0 %v3103_v25  ;;  %2879 = vmatprep.mubr.msk.bf16.mxu0 %vm3317_vm0, %v3316_v0  ;;  %v3131_v30 = vld [vmem:[#allocation5 + $0x470] sm:$0xff]   ;;  %v3133_v34 = vld [vmem:[#allocation5 + $0x4a8] sm:$0xff]  }
 0x311   : > { %2865 = vmatprep.subr.bf16.mxu0 %v3316_v0  ;;  %v3132_v33 = vld [vmem:[#allocation5 + $0x430] sm:$0xff]   ;;  %v3134_v35 = vld [vmem:[#allocation5 + $0x468] sm:$0xff]  }
 0x312   : > { %2483 = vmatprep.mubr.msk.bf16.mxu1 %vm3519_vm7, %v2482_v31  ;;  %v3135_v36 = vld [vmem:[#allocation5 + $0x428] sm:$0xff]   ;;  %v3136_v31 = vld [vmem:[#allocation5 + $0x4a0] sm:$0xff]  }
 0x313   : > { %2486 = vmatmul.mubr.msk.bf16.vlgmr.msra.gmra.mxu1 %vm3595_vm10, %v2485_v37  ;;  %v3137_v37 = vld [vmem:[#allocation5 + $0x460] sm:$0xff]  }
 0x314   : > { %2693 = vmatpush3.bf16.msra.mxu1 %v3105_v38  ;;  %2866 = vmatpush3.bf16.msra.mxu0 %v3106_v39  ;;  %v3138_v38 = vld [vmem:[#allocation5 + $0x420] sm:$0xff]   ;;  %v3139_v39 = vld [vmem:[#allocation5 + $0x498] sm:$0xff]  }
 0x315   : > { %2867 = vmatprep.subr.bf16.mxu0 %v3316_v0  ;;  %2694 = vmatprep.subr.bf16.mxu1 %v3107_v41  ;;  %v3140_v41 = vld [vmem:[#allocation5 + $0x458] sm:$0xff]  }
 0x318   : > { %2695 = vmatpush3.bf16.msra.mxu1 %v3108_v42  ;;  %2868 = vmatpush3.bf16.msra.mxu0 %v3109_v45  ;;  %v3141_v42 = vld [vmem:[#allocation5 + $0x418] sm:$0xff]   ;;  %v3142_v45 = vld [vmem:[#allocation5 + $0x490] sm:$0xff]  }
 0x319   : > { %2869 = vmatprep.subr.bf16.mxu0 %v3316_v0  ;;  %2696 = vmatprep.subr.bf16.mxu1 %v3110_v46  ;;  %v3143_v46 = vld [vmem:[#allocation5 + $0x450] sm:$0xff]  }
 0x31c   : > { %2697 = vmatpush3.bf16.msra.mxu1 %v3111_v47  ;;  %2870 = vmatpush3.bf16.msra.mxu0 %v3112_v48  ;;  %v3144_v47 = vld [vmem:[#allocation5 + $0x410] sm:$0xff]   ;;  %v3145_v48 = vld [vmem:[#allocation5 + $0x488] sm:$0xff]  }
 0x31d   : > { %2871 = vmatprep.subr.bf16.mxu0 %v3316_v0  ;;  %2698 = vmatprep.subr.bf16.mxu1 %v3113_v40  ;;  %v3146_v40 = vld [vmem:[#allocation5 + $0x448] sm:$0xff]  }
 0x320   : > { %2699 = vmatpush3.bf16.msra.mxu1 %v3114_v49  ;;  %2872 = vmatpush3.bf16.msra.mxu0 %v3115_v43  ;;  %v3147_v49 = vld [vmem:[#allocation5 + $0x408] sm:$0xff]   ;;  %v3148_v43 = vld [vmem:[#allocation5 + $0x480] sm:$0xff]  }
 0x321   : > { %2873 = vmatprep.subr.bf16.mxu0 %v3316_v0  ;;  %2700 = vmatprep.subr.bf16.mxu1 %v3116_v50  ;;  %v3149_v50 = vld [vmem:[#allocation5 + $0x440] sm:$0xff]  }
 0x324   : > { %2701 = vmatpush3.bf16.msra.mxu1 %v3117_v51  ;;  %2874 = vmatpush3.bf16.msra.mxu0 %v3118_v52  ;;  %v3150_v51 = vld [vmem:[#allocation5 + $0x400] sm:$0xff]  }
 0x325   : > { %2875 = vmatprep.subr.bf16.mxu0 %v3316_v0  ;;  %2702 = vmatprep.subr.bf16.mxu1 %v3119_v53 }
 0x328   : > { %2703 = vmatpush3.bf16.msra.mxu1 %v3120_v54  ;;  %2876 = vmatpush3.bf16.msra.mxu0 %v3121_v55 }
 0x329   : > { %2877 = vmatprep.subr.bf16.mxu0 %v3316_v0  ;;  %2704 = vmatprep.subr.bf16.mxu1 %v3122_v56  ;;  %v2487_v56 = vld [vmem:[#allocation7 + $0x5] ss:$0 sm:$0xff] }
 0x32c   : > { %2705 = vmatpush3.bf16.msra.mxu1 %v3123_v57  ;;  %2878 = vmatpush3.bf16.msra.mxu0 %v3124_v58 }
 0x32d   : > { %2883 = vmatprep.subr.bf16.mxu0 %v3316_v0  ;;  %2706 = vmatprep.subr.bf16.mxu1 %v3125_v59 }
 0x330   : > { %2707 = vmatpush3.bf16.msra.mxu1 %v3126_v60 }
 0x331   : > { %2723 = vmatprep.subr.bf16.mxu1 %v3128_v61 }
 0x3cf   : > { %v1522_v62 = vpop.f32.mrf.mxu0 }
 0x3d1   : > { %v2861_v63 = vpop.f32.mrf.mxu0 }
 0x3d3   : > { %v2677_v1 = vpop.f32.mrf.mxu1  ;;  %v1525_v2 = vpop.f32.mrf.mxu0 }
 0x3d5   : > { %v2678_v4 = vpop.f32.mrf.mxu1  ;;  %v2862_v5 = vpop.f32.mrf.mxu0 }
 0x3d6   : > { %v2679_v6 = vadd.f32 %v2678_v4, %v2677_v1 }
 0x3d7   : > { %v2680_v7 = vpop.f32.mrf.mxu1 }
 0x3d8   : > { %v1482_v8 = vadd.f32 %v2679_v6, %v2456_v3 }
 0x3d9   : > { %v2681_v9 = vpop.f32.mrf.mxu1 }
 0x3da   : > { %v1523_v10 = vadd.f32 %v1522_v62, %v1482_v8  ;;  %v2682_v11 = vadd.f32 %v2681_v9, %v2680_v7 }
 0x3dc   : > { %v1529_v12 = vmax.f32 %v1523_v10, 0.0  ;;  %v1485_v13 = vadd.f32 %v2682_v11, %v2456_v3 }
 0x3de   : > { %v1531_v14 = vadd.f32 %v1529_v12, %v3574_v28  ;;  %v1526_v15 = vadd.f32 %v1525_v2, %v1485_v13  ;;  %v3151_v12 = vld [vmem:[#allocation5 + $0x4f8] sm:$0xff]  }
 0x3e0   : > { %v1530_v16 = vmax.f32 %v1526_v15, 0.0  ;;  %v1533_v17 = vmax.f32 %v1531_v14, 0.0  ;;  %v3152_v14 = vld [vmem:[#allocation5 + $0x4f0] sm:$0xff]   ;;  %v3153_v15 = vld [vmem:[#allocation5 + $0x4e8] sm:$0xff]  }
 0x3e2   : > { %v1532_v18 = vadd.f32 %v1530_v16, %v3576_v32  ;;  %v1538_v22 = vrot.slane %v1533_v17, 4  ;;  %v1537_v32 = vpack.c.bf16 %v1533_v17, %v3316_v0  ;;  %v3155_v16 = vld [vmem:[#allocation5 + $0x4d8] sm:$0xff]  }
 0x3e4   : > { %v1534_v19 = vmax.f32 %v1532_v18, 0.0  ;;  %v3158_v18 = vld [vmem:[#allocation5 + $0x4c0] sm:$0xff]  }
 0x3e6   : > { %v1539_v23 = vrot.slane %v1534_v19, 4  ;;  %v3637_v24 = vpack.c.bf16 %v1534_v19, %v1533_v17  ;;  %v3157_v17 = vld [vmem:[#allocation5 + $0x4c8] sm:$0xff]  }
 0x3e8   : > { %2880 = vmatmul.mubr.bf16.vlgmr.msra.gmra.mxu0 %v3637_v24  ;;  %v1540_v25 = vsel %vm940_vm9, %v1538_v22, %v1539_v23  ;;  %v1541_v26 = vsel %vm940_vm9, %v1539_v23, %v1538_v22 }
 0x3e9   : > { %v2513_v28 = vpack.c.bf16 %v1540_v25, %v1541_v26  ;;  %2884 = vmatpush3.bf16.msra.mxu0 %v3127_v20  ;;  %2899 = vmatprep.mubr.msk.bf16.mxu0 %vm3317_vm0, %v3316_v0 }
 0x3ea   : > { %2885 = vmatprep.subr.bf16.mxu0 %v3316_v0 }
 0x3eb   : > { %2514 = vmatprep.mubr.msk.bf16.mxu1 %vm3595_vm10, %v2513_v28 }
 0x3ec   : > { %1776 = vmatmul.mubr.bf16.vlgmr.msra.gmra.mxu1 %v1537_v32 }
 0x3ed   : > { %2724 = vmatpush3.bf16.msra.mxu1 %v3129_v27  ;;  %2886 = vmatpush3.bf16.msra.mxu0 %v3130_v29  ;;  %v2515_v29 = vld [vmem:[#allocation7 + $0x6] ss:$0 sm:$0xff] }
 0x3ee   : > { %2725 = vmatprep.subr.bf16.mxu1 %v3131_v30  ;;  %2887 = vmatprep.subr.bf16.mxu0 %v3316_v0 }
 0x3f1   : > { %2726 = vmatpush3.bf16.msra.mxu1 %v3132_v33  ;;  %2888 = vmatpush3.bf16.msra.mxu0 %v3133_v34 }
 0x3f2   : > { %2889 = vmatprep.subr.bf16.mxu0 %v3316_v0  ;;  %2727 = vmatprep.subr.bf16.mxu1 %v3134_v35 }
 0x3f5   : > { %2728 = vmatpush3.bf16.msra.mxu1 %v3135_v36  ;;  %2890 = vmatpush3.bf16.msra.mxu0 %v3136_v31 }
 0x3f6   : > { %2891 = vmatprep.subr.bf16.mxu0 %v3316_v0  ;;  %2729 = vmatprep.subr.bf16.mxu1 %v3137_v37 }
 0x3f9   : > { %2730 = vmatpush3.bf16.msra.mxu1 %v3138_v38  ;;  %2892 = vmatpush3.bf16.msra.mxu0 %v3139_v39 }
 0x3fa   : > { %2893 = vmatprep.subr.bf16.mxu0 %v3316_v0  ;;  %2731 = vmatprep.subr.bf16.mxu1 %v3140_v41 }
 0x3fd   : > { %2732 = vmatpush3.bf16.msra.mxu1 %v3141_v42  ;;  %2894 = vmatpush3.bf16.msra.mxu0 %v3142_v45 }
 0x3fe   : > { %2895 = vmatprep.subr.bf16.mxu0 %v3316_v0  ;;  %2733 = vmatprep.subr.bf16.mxu1 %v3143_v46 }
 0x401   : > { %2734 = vmatpush3.bf16.msra.mxu1 %v3144_v47  ;;  %2896 = vmatpush3.bf16.msra.mxu0 %v3145_v48 }
 0x402   : > { %2897 = vmatprep.subr.bf16.mxu0 %v3316_v0  ;;  %2735 = vmatprep.subr.bf16.mxu1 %v3146_v40 }
 0x405   : > { %2736 = vmatpush3.bf16.msra.mxu1 %v3147_v49  ;;  %2898 = vmatpush3.bf16.msra.mxu0 %v3148_v43 }
 0x406   : > { %2737 = vmatprep.subr.bf16.mxu1 %v3149_v50 }
 0x409   : > { %2738 = vmatpush3.bf16.msra.mxu1 %v3150_v51 }
 0x40a   : > { %2903 = vmatprep.subr.bf16.mxu1 %v3316_v0 }
 0x4a8   : > { %v1818_v52 = vpop.f32.mrf.mxu0 }
 0x4aa   : > { %v2881_v53 = vpop.f32.mrf.mxu0 }
 0x4ac   : > { %v2708_v54 = vpop.f32.mrf.mxu1  ;;  %v1821_v55 = vpop.f32.mrf.mxu0 }
 0x4ae   : > { %v2709_v57 = vpop.f32.mrf.mxu1  ;;  %v2882_v58 = vpop.f32.mrf.mxu0 }
 0x4af   : > { %v2710_v59 = vadd.f32 %v2709_v57, %v2708_v54 }
 0x4b0   : > { %v2711_v60 = vpop.f32.mrf.mxu1 }
 0x4b1   : > { %v1778_v61 = vadd.f32 %v2710_v59, %v2487_v56 }
 0x4b2   : > { %v2712_v62 = vpop.f32.mrf.mxu1 }
 0x4b3   : > { %v1819_v63 = vadd.f32 %v1818_v52, %v1778_v61  ;;  %v2713_v1 = vadd.f32 %v2712_v62, %v2711_v60 }
 0x4b5   : > { %v1781_v2 = vadd.f32 %v2713_v1, %v2487_v56  ;;  %v1825_v3 = vmax.f32 %v1819_v63, 0.0 }
 0x4b7   : > { %v1822_v4 = vadd.f32 %v1821_v55, %v1781_v2  ;;  %v1830_v6 = vrot.slane %v1825_v3, 4  ;;  %v1829_v13 = vpack.c.bf16 %v1825_v3, %v3316_v0 }
 0x4b9   : > { %v1826_v5 = vmax.f32 %v1822_v4, 0.0 }
 0x4bb   : > { %v1831_v7 = vrot.slane %v1826_v5, 4  ;;  %v1837_v8 = vpack.c.bf16 %v1826_v5, %v1825_v3 }
 0x4bd   : > { %2900 = vmatmul.mubr.bf16.vlgmr.msra.gmra.mxu0 %v1837_v8  ;;  %v1832_v9 = vsel %vm940_vm9, %v1830_v6, %v1831_v7  ;;  %v1833_v10 = vsel %vm940_vm9, %v1831_v7, %v1830_v6 }
 0x4be   : > { %v2541_v11 = vpack.c.bf16 %v1832_v9, %v1833_v10 }
 0x4c0   : > { %2542 = vmatprep.mubr.msk.bf16.mxu1 %vm3595_vm10, %v2541_v11 }
 0x4c1   : > { %2068 = vmatmul.mubr.bf16.vlgmr.msra.gmra.mxu1 %v1829_v13 }
 0x4c2   : > { %2904 = vmatpush3.bf16.msra.mxu1 %v3151_v12  ;;  %2919 = vmatprep.mubr.msk.bf16.mxu1 %vm3317_vm0, %v3316_v0 }
 0x4c3   : > { %2905 = vmatprep.subr.bf16.mxu1 %v3316_v0 }
 0x4c6   : > { %2906 = vmatpush3.bf16.msra.mxu1 %v3152_v14 }
 0x4c7   : > { %2907 = vmatprep.subr.bf16.mxu1 %v3316_v0 }
 0x4ca   : > { %2908 = vmatpush3.bf16.msra.mxu1 %v3153_v15 }
 0x4cb   : > { %2909 = vmatprep.subr.bf16.mxu1 %v3316_v0 }
 0x4ce   : > { %2910 = vmatpush3.bf16.msra.mxu1 %v3154_v21 }
 0x4cf   : > { %2911 = vmatprep.subr.bf16.mxu1 %v3316_v0 }
 0x4d2   : > { %2912 = vmatpush3.bf16.msra.mxu1 %v3155_v16 }
 0x4d3   : > { %2913 = vmatprep.subr.bf16.mxu1 %v3316_v0 }
 0x4d6   : > { %2914 = vmatpush3.bf16.msra.mxu1 %v3156_v44 }
 0x4d7   : > { %2915 = vmatprep.subr.bf16.mxu1 %v3316_v0 }
 0x4da   : > { %2916 = vmatpush3.bf16.msra.mxu1 %v3157_v17 }
 0x4db   : > { %2917 = vmatprep.subr.bf16.mxu1 %v3316_v0  ;;  %v2543_v0 = vld [vmem:[#allocation7 + $0x7] ss:$0 sm:$0xff] }
 0x4de   : > { %2918 = vmatpush3.bf16.msra.mxu1 %v3158_v18 }
 0x4e1   : > { %2920 = vmatmul.mubr.bf16.vlgmr.msra.gmra.mxu1 %v3637_v24 }
 0x57d   : > { %v2110_v19 = vpop.f32.mrf.mxu0 }
 0x57f   : > { %v2901_v20 = vpop.f32.mrf.mxu0 }
 0x581   : > { %v2113_v22 = vpop.f32.mrf.mxu0  ;;  %v2739_v25 = vpop.f32.mrf.mxu1 }
 0x583   : > { %v2902_v23 = vpop.f32.mrf.mxu0  ;;  %v2740_v26 = vpop.f32.mrf.mxu1 }
 0x584   : > { %v2741_v27 = vadd.f32 %v2740_v26, %v2739_v25 }
 0x585   : > { %v2742_v28 = vpop.f32.mrf.mxu1 }
 0x586   : > { %v2070_v30 = vadd.f32 %v2741_v27, %v2515_v29 }
 0x587   : > { %v2743_v32 = vpop.f32.mrf.mxu1 }
 0x588   : > { %v2744_v33 = vadd.f32 %v2743_v32, %v2742_v28  ;;  %v2111_v34 = vadd.f32 %v2110_v19, %v2070_v30 }
 0x58a   : > { %v2073_v35 = vadd.f32 %v2744_v33, %v2515_v29  ;;  %v2117_v24 = vmax.f32 %v2111_v34, 0.0 }
 0x58c   : > { %v2114_v31 = vadd.f32 %v2113_v22, %v2073_v35 }
 0x58e   : > { %v2118_v45 = vmax.f32 %v2114_v31, 0.0 }
 0x5a1   : > { %v2222_v36 = vpop.f32.mrf.mxu1 }
 0x5a2   : > { %v2223_v37 = vadd.f32 %v2543_v0, %v2222_v36 }
 0x5a3   : > { %v2921_v38 = vpop.f32.mrf.mxu1 }
 0x5a4   : > { %v2229_v39 = vadd.f32 %v2223_v37, %v2117_v24 }
 0x5a5   : > { %v2225_v41 = vpop.f32.mrf.mxu1 }
 0x5a6   : > { %v2231_v42 = vmax.f32 %v2229_v39, 0.0  ;;  %v2226_v46 = vadd.f32 %v2543_v0, %v2225_v41 }
 0x5a7   : > { %v2922_v47 = vpop.f32.mrf.mxu1 }
 0x5a8   : > { %2233 = vst [vmem:[%s215_s18] sm:$0xff] %v2231_v42  ;;  %v2230_v48 = vadd.f32 %v2226_v46, %v2118_v45 }
 0x5aa   : > { %v2232_v40 = vmax.f32 %v2230_v48, 0.0 }
 0x5ac   : > { %2234 = vst [vmem:[%s215_s18 + $0x8] sm:$0xff] %v2232_v40 }
 0x5ad   : > { %3252 = shalt.err (!%p3249_p9)
}
 0x5ae   : > { %s3253_s22 = scalar_lea.hbm %s3682_s29, 256  ;;  %s3257_s26 = scalar_lea.hbm %s3728_s3, 512 }
 0x5af   : > { %p3254_p13 = scmp.ne.s32.totalorder %s3682_s29, %s3253_s22  ;;  %p3258_p4 = scmp.lt.s32.totalorder %s3682_s29, %s3728_s3 }
 0x5b0   : > { %p3259_p8 = scmp.lt.s32.totalorder %s3257_s26, %s3253_s22 }
 0x5b1   : > { %p3255_p5 = pnand %p3254_p13, %p3750_p10 }
 0x5b2   : > { %p3260_p3 = por %p3259_p8, %p3258_p4 }
 0x5b3   : > { %p3256_p0 = pneg %p3255_p5 }
 0x5b5   : > { %p3261_p11 = pnand %p3260_p3, %p3256_p0 }
 0x5b7   : > { %3264 = shalt.err (!%p3261_p11)
}
 0x5b8   : > { %s3320_s6 = smov 128   ;;  %s3321_s18 = smov 8  }
 0x5b9   : > { %2933 = dma.vmem_to_hbm [thread:$0]  (%p3750_p10), %s3677_s20, 256, %s3682_s29, %s2236_s8, %s3320_s6, %s3320_s6, %s3321_s18  }
 0x5ba PF: > { %s2264_s25 = sand.u32 1, %s3295_s12   ;;  %p3751_p1 = scmp.ne.s32.totalorder %s3734_s19, 0 }
 0x5bb   : > { %p3752_p2 = scmp.ge.s32.totalorder %s3307_s15, 2  ;;  %s2265_s27 = scalar_lea.sflag [#allocation4], %s2264_s25 }
 0x5bd   : > { %p2947_p6 = pnand %p3752_p2, %p3751_p1 }
 0x5bf   : > { %p2948_p12 = pneg %p2947_p6 }
 0x5c1   : > { %3290 = dma.done.wait (%p2948_p12), %s2265_s27, 256  }
 0x5c2   : > { %3292 = vsyncadd (%p2948_p12), %s2265_s27, 4294967040  ;;  %p17_p7 = scmp.ge.s32.totalorder %s3414_s7, 4   ;;  %s3753_s12 = smov %s3299_s13 }
 0x5c3   : > { %s3754_s13 = smov %s3303_s14  ;;  %s3755_s14 = smov %s3430_s11 }
 0x5c4   : > { %s3756_s15 = smov %s3414_s7  ;;  %19 = sbr.rel (!%p17_p7) target bundleno = 6 (0x6), region = 85 }
 0x5c9   :  { %2270 = vsyncpa [#allocation3], 1 }
 0x5ca   :  { %2272 = vsyncpa [#allocation3 + $0x1], 1 }
 0x5cb   :  { %2273 = vsyncpa [#allocation6], 1 }
 0x5cc   :  { %2274 = vsyncpa [#allocation4], 1 }
 0x5cd   :  { %2276 = vsyncpa [#allocation4 + $0x1], 1 }

</bundles_post_ra>
